<compile_context>
chip_gen: v5e
topology: v5e:2x2
jax: 0.10.0
libtpu: 0.0.40
codegen_flags: <defaults>
</compile_context>

<pallas_src>
import functools

import jax
import jax.numpy as jnp
from jax import lax
from jax.experimental import pallas as pl
from jax.experimental.pallas import tpu as pltpu


def _round_up(x, m):
    return ((x + m - 1) // m) * m


def _rnn_kernel(layer_dim, *refs):
    # refs: x_ref, [w_cat, b] * layer_dim, fc_w, fc_b, out_ref, h_scratch
    x_ref = refs[0]
    layer_refs = refs[1:1 + 2 * layer_dim]
    fc_w_ref = refs[1 + 2 * layer_dim]
    fc_b_ref = refs[2 + 2 * layer_dim]
    out_ref = refs[3 + 2 * layer_dim]
    h_ref = refs[4 + 2 * layer_dim]

    c = pl.program_id(0)  # chunk index over time

    @pl.when(c == 0)
    def _():
        h_ref[...] = jnp.zeros_like(h_ref)

    time_block = x_ref.shape[0]
    batch_pad = h_ref.shape[1]
    hidden_pad = h_ref.shape[2]

    # Hoist per-layer bias broadcasts out of the time loop (JAX won't CSE them).
    biases = [
        jnp.broadcast_to(layer_refs[2 * l + 1][...], (batch_pad, hidden_pad))
        for l in range(layer_dim)
    ]

    # Hidden states carried through the time loop as values (stay in vregs).
    h0 = tuple(h_ref[l] for l in range(layer_dim))

    def step(t, hs):
        inp = x_ref[t]  # (batch_pad, in_pad) for this timestep
        new_hs = []
        for l in range(layer_dim):
            w_cat = layer_refs[2 * l][...]            # (in_l_pad + hidden_pad, hidden_pad)
            xh = jnp.concatenate([inp, hs[l]], axis=-1)
            pre = jnp.dot(xh.astype(w_cat.dtype), w_cat,
                          preferred_element_type=jnp.float32) + biases[l]
            h_new = jnp.maximum(pre, 0.0)             # nonlinearity='relu'
            new_hs.append(h_new)
            inp = h_new
        return tuple(new_hs)

    hs = lax.fori_loop(0, time_block, step, h0, unroll=True)

    # Persist hidden state for the next time chunk.
    for l in range(layer_dim):
        h_ref[l] = hs[l]

    @pl.when(c == pl.num_programs(0) - 1)
    def _():
        fc_w = fc_w_ref[...]
        out_ref[...] = (jnp.dot(hs[layer_dim - 1].astype(fc_w.dtype), fc_w,
                                preferred_element_type=jnp.float32)
                        + fc_b_ref[...])


def rnn_model_forward(x, params, *, hidden_dim, layer_dim, output_dim,
                      time_block=None, weight_dtype=jnp.float32):
    """x: (batch, seq, input_dim) float32 -> (batch, output_dim) float32."""
    batch, seq, input_dim = x.shape

    # Pad to (8, 128)-aligned tiles: sublane (batch) multiple of 8, lanes multiple of 128.
    # (On v6e, rounding hidden to 256 additionally fills both MXU passes.)
    batch_pad = _round_up(batch, 8)
    in_pad = _round_up(input_dim, 128)
    hidden_pad = _round_up(hidden_dim, 128)
    out_pad = _round_up(output_dim, 128)

    if time_block is None:
        time_block = seq  # whole sequence resident -> a single grid step
    assert seq % time_block == 0, "time_block must divide seq"
    num_chunks = seq // time_block

    # (batch, seq, in) -> (seq, batch_pad, in_pad), zero padded.
    x_tbd = jnp.transpose(x, (1, 0, 2))
    x_tbd = jnp.pad(x_tbd, ((0, 0), (0, batch_pad - batch), (0, in_pad - input_dim)))

    operands = [x_tbd]
    in_specs = [pl.BlockSpec((time_block, batch_pad, in_pad), lambda c: (c, 0, 0))]

    def const_spec(shape):
        return pl.BlockSpec(shape, lambda c: tuple(0 for _ in shape))

    # Fuse W_ih / W_hh into one matrix per layer, fold biases, pad with zeros so the
    # padded hidden lanes stay exactly zero through the recurrence.
    for l in range(layer_dim):
        w_ih, w_hh, b_ih, b_hh = params["layers"][l]
        in_l = w_ih.shape[0]
        in_l_pad = in_pad if l == 0 else hidden_pad
        w_ih_p = jnp.zeros((in_l_pad, hidden_pad), jnp.float32)
        w_ih_p = w_ih_p.at[:in_l, :hidden_dim].set(w_ih)
        w_hh_p = jnp.zeros((hidden_pad, hidden_pad), jnp.float32)
        w_hh_p = w_hh_p.at[:hidden_dim, :hidden_dim].set(w_hh)
        w_cat = jnp.concatenate([w_ih_p, w_hh_p], axis=0).astype(weight_dtype)
        b = jnp.zeros((1, hidden_pad), jnp.float32)
        b = b.at[:, :hidden_dim].set(b_ih + b_hh)
        operands += [w_cat, b]
        in_specs += [const_spec(w_cat.shape), const_spec(b.shape)]

    fc_w, fc_b = params["fc"]
    fc_w_p = jnp.zeros((hidden_pad, out_pad), jnp.float32)
    fc_w_p = fc_w_p.at[:hidden_dim, :output_dim].set(fc_w).astype(weight_dtype)
    fc_b_p = jnp.zeros((1, out_pad), jnp.float32)
    fc_b_p = fc_b_p.at[:, :output_dim].set(fc_b)
    operands += [fc_w_p, fc_b_p]
    in_specs += [const_spec(fc_w_p.shape), const_spec(fc_b_p.shape)]

    kernel = functools.partial(_rnn_kernel, layer_dim)

    out_padded = pl.pallas_call(
        kernel,
        out_shape=jax.ShapeDtypeStruct((batch_pad, out_pad), jnp.float32),
        grid_spec=pltpu.PrefetchScalarGridSpec(
            num_scalar_prefetch=0,
            grid=(num_chunks,),
            in_specs=in_specs,
            # Resident, lane-dense output tile, written only on the last chunk.
            out_specs=pl.BlockSpec((batch_pad, out_pad), lambda c: (0, 0)),
            scratch_shapes=[pltpu.VMEM((layer_dim, batch_pad, hidden_pad), jnp.float32)],
        ),
        compiler_params=pltpu.CompilerParams(
            dimension_semantics=("arbitrary",),  # sequential recurrence over time
            vmem_limit_bytes=64 << 20,
        ),
    )(*operands)

    return out_padded[:batch, :output_dim]


def init_params(key, input_dim, hidden_dim, layer_dim, output_dim):
    """Deterministic init mimicking PyTorch's U(-1/sqrt(H), 1/sqrt(H))."""
    bound = 1.0 / jnp.sqrt(hidden_dim)
    layers = []
    for l in range(layer_dim):
        in_l = input_dim if l == 0 else hidden_dim
        key, k1, k2, k3, k4 = jax.random.split(key, 5)
        # stored pre-transposed: (in, hidden) and (hidden, hidden)
        w_ih = jax.random.uniform(k1, (in_l, hidden_dim), jnp.float32, -bound, bound)
        w_hh = jax.random.uniform(k2, (hidden_dim, hidden_dim), jnp.float32, -bound, bound)
        b_ih = jax.random.uniform(k3, (1, hidden_dim), jnp.float32, -bound, bound)
        b_hh = jax.random.uniform(k4, (1, hidden_dim), jnp.float32, -bound, bound)
        layers.append((w_ih, w_hh, b_ih, b_hh))
    key, k1, k2 = jax.random.split(key, 3)
    fc_bound = 1.0 / jnp.sqrt(hidden_dim)
    fc_w = jax.random.uniform(k1, (hidden_dim, output_dim), jnp.float32, -fc_bound, fc_bound)
    fc_b = jax.random.uniform(k2, (1, output_dim), jnp.float32, -fc_bound, fc_bound)
    return {"layers": layers, "fc": (fc_w, fc_b)}


def reference_forward(x, params, *, hidden_dim, layer_dim):
    """Pure-JAX reference reproducing nn.RNN(relu, batch_first) + fc on last step."""
    batch, seq, _ = x.shape
    h = [jnp.zeros((batch, hidden_dim), jnp.float32) for _ in range(layer_dim)]
    for t in range(seq):
        inp = x[:, t, :]
        for l in range(layer_dim):
            w_ih, w_hh, b_ih, b_hh = params["layers"][l]
            h[l] = jnp.maximum(inp @ w_ih + h[l] @ w_hh + b_ih + b_hh, 0.0)
            inp = h[l]
    fc_w, fc_b = params["fc"]
    return h[-1] @ fc_w + fc_b


if __name__ == "__main__":
    batch, seq = 2, 8
    input_dim, hidden_dim, layer_dim, output_dim = 16, 32, 2, 10

    key = jax.random.PRNGKey(0)
    kx, kp = jax.random.split(key)
    x = jax.random.normal(kx, (batch, seq, input_dim), jnp.float32)
    params = init_params(kp, input_dim, hidden_dim, layer_dim, output_dim)

    out = rnn_model_forward(x, params, hidden_dim=hidden_dim,
                            layer_dim=layer_dim, output_dim=output_dim)
    out = jax.block_until_ready(out)

    ref = reference_forward(x, params, hidden_dim=hidden_dim, layer_dim=layer_dim)
    assert out.shape == (batch, output_dim)
    assert jnp.allclose(out, ref, atol=1e-5, rtol=1e-5), (out, ref)

    print("KERNEL_OK")
</pallas_src>

<mosaic_0001>
module attributes {stable_mosaic.version = 11 : i64} {
  func.func @_rnn_kernel(%arg0: i32, %arg1: memref<8x8x128xf32, #tpu.memory_space<vmem>>, %arg2: memref<256x128xf32, #tpu.memory_space<vmem>>, %arg3: memref<1x128xf32, #tpu.memory_space<vmem>>, %arg4: memref<256x128xf32, #tpu.memory_space<vmem>>, %arg5: memref<1x128xf32, #tpu.memory_space<vmem>>, %arg6: memref<128x128xf32, #tpu.memory_space<vmem>>, %arg7: memref<1x128xf32, #tpu.memory_space<vmem>>, %arg8: memref<8x128xf32, #tpu.memory_space<vmem>>, %arg9: memref<2x8x128xf32, #tpu.memory_space<vmem>>) attributes {dimension_semantics = [#tpu.dimension_semantics<arbitrary>], iteration_bounds = array<i64: 1>, scalar_prefetch = 0 : i64, scratch_operands = 1 : i64, tpu.core_type = #tpu.core_type<tc>, window_params = [{transform_indices = @transform_0, window_bounds = array<i64: 8, 8, 128>}, {pipeline_mode = #tpu.pipeline_mode<synchronous>, transform_indices = @transform_1, window_bounds = array<i64: 256, 128>}, {pipeline_mode = #tpu.pipeline_mode<synchronous>, transform_indices = @transform_2, window_bounds = array<i64: 1, 128>}, {pipeline_mode = #tpu.pipeline_mode<synchronous>, transform_indices = @transform_3, window_bounds = array<i64: 256, 128>}, {pipeline_mode = #tpu.pipeline_mode<synchronous>, transform_indices = @transform_4, window_bounds = array<i64: 1, 128>}, {pipeline_mode = #tpu.pipeline_mode<synchronous>, transform_indices = @transform_5, window_bounds = array<i64: 128, 128>}, {pipeline_mode = #tpu.pipeline_mode<synchronous>, transform_indices = @transform_6, window_bounds = array<i64: 1, 128>}, {pipeline_mode = #tpu.pipeline_mode<synchronous>, transform_indices = @transform_7, window_bounds = array<i64: 8, 128>}]} {
    %c0_i32 = arith.constant 0 : i32
    %0 = arith.cmpi eq, %arg0, %c0_i32 : i32
    %1 = arith.extui %0 : i1 to i32
    %c0_i32_0 = arith.constant 0 : i32
    %2 = arith.cmpi ne, %1, %c0_i32_0 : i32
    scf.if %2 {
      %cst_97 = arith.constant 0.000000e+00 : f32
      %142 = vector.broadcast %cst_97 : f32 to vector<2x8x128xf32>
      %c0_98 = arith.constant 0 : index
      %c0_99 = arith.constant 0 : index
      %c0_100 = arith.constant 0 : index
      %143 = vector.load %arg9[%c0_98, %c0_99, %c0_100] : memref<2x8x128xf32, #tpu.memory_space<vmem>>, vector<2x8x128xf32>
      tpu.vector_store %arg9[%c0_98, %c0_99, %c0_100], %142 {strides = array<i32>} : memref<2x8x128xf32, #tpu.memory_space<vmem>>, vector<2x8x128xf32>,
    } else {
    }
    %c0 = arith.constant 0 : index
    %c0_1 = arith.constant 0 : index
    %3 = vector.load %arg3[%c0, %c0_1] : memref<1x128xf32, #tpu.memory_space<vmem>>, vector<1x128xf32>
    %4 = vector.shape_cast %3 : vector<1x128xf32> to vector<1x128xf32>
    %5 = vector.broadcast %4 : vector<1x128xf32> to vector<8x128xf32>
    %c0_2 = arith.constant 0 : index
    %c0_3 = arith.constant 0 : index
    %6 = vector.load %arg5[%c0_2, %c0_3] : memref<1x128xf32, #tpu.memory_space<vmem>>, vector<1x128xf32>
    %7 = vector.shape_cast %6 : vector<1x128xf32> to vector<1x128xf32>
    %8 = vector.broadcast %7 : vector<1x128xf32> to vector<8x128xf32>
    %c0_4 = arith.constant 0 : index
    %c0_5 = arith.constant 0 : index
    %c0_6 = arith.constant 0 : index
    %9 = vector.load %arg9[%c0_4, %c0_5, %c0_6] : memref<2x8x128xf32, #tpu.memory_space<vmem>>, vector<1x8x128xf32>
    %10 = vector.shape_cast %9 : vector<1x8x128xf32> to vector<8x128xf32>
    %c1 = arith.constant 1 : index
    %c0_7 = arith.constant 0 : index
    %c0_8 = arith.constant 0 : index
    %11 = vector.load %arg9[%c1, %c0_7, %c0_8] : memref<2x8x128xf32, #tpu.memory_space<vmem>>, vector<1x8x128xf32>
    %12 = vector.shape_cast %11 : vector<1x8x128xf32> to vector<8x128xf32>
    %c0_i32_9 = arith.constant 0 : i32
    %13 = arith.index_cast %c0_i32_9 : i32 to index
    %c0_10 = arith.constant 0 : index
    %c0_11 = arith.constant 0 : index
    %14 = vector.load %arg1[%13, %c0_10, %c0_11] : memref<8x8x128xf32, #tpu.memory_space<vmem>>, vector<1x8x128xf32>
    %15 = vector.shape_cast %14 : vector<1x8x128xf32> to vector<8x128xf32>
    %c0_12 = arith.constant 0 : index
    %c0_13 = arith.constant 0 : index
    %16 = vector.load %arg2[%c0_12, %c0_13] : memref<256x128xf32, #tpu.memory_space<vmem>>, vector<256x128xf32>
    %17 = tpu.concatenate %15, %10 in 1 : vector<8x128xf32>, vector<8x128xf32> -> vector<8x256xf32>
    %cst = arith.constant dense<0.000000e+00> : vector<8x128xf32>
    %18 = tpu.matmul %17, %16, %cst {dimension_numbers = #tpu.dot_dimension_numbers<[1], [0], [0], [1], [0, 0, 1, 1], [], []>} : vector<8x256xf32>, vector<256x128xf32>, vector<8x128xf32> -> vector<8x128xf32>
    %19 = arith.addf %18, %5 : vector<8x128xf32>
    %cst_14 = arith.constant 0.000000e+00 : f32
    %20 = vector.broadcast %cst_14 : f32 to vector<8x128xf32>
    %21 = arith.maximumf %19, %20 : vector<8x128xf32>
    %c0_15 = arith.constant 0 : index
    %c0_16 = arith.constant 0 : index
    %22 = vector.load %arg4[%c0_15, %c0_16] : memref<256x128xf32, #tpu.memory_space<vmem>>, vector<256x128xf32>
    %23 = tpu.concatenate %21, %12 in 1 : vector<8x128xf32>, vector<8x128xf32> -> vector<8x256xf32>
    %cst_17 = arith.constant dense<0.000000e+00> : vector<8x128xf32>
    %24 = tpu.matmul %23, %22, %cst_17 {dimension_numbers = #tpu.dot_dimension_numbers<[1], [0], [0], [1], [0, 0, 1, 1], [], []>} : vector<8x256xf32>, vector<256x128xf32>, vector<8x128xf32> -> vector<8x128xf32>
    %25 = arith.addf %24, %8 : vector<8x128xf32>
    %cst_18 = arith.constant 0.000000e+00 : f32
    %26 = vector.broadcast %cst_18 : f32 to vector<8x128xf32>
    %27 = arith.maximumf %25, %26 : vector<8x128xf32>
    %c1_i32 = arith.constant 1 : i32
    %28 = arith.index_cast %c1_i32 : i32 to index
    %c0_19 = arith.constant 0 : index
    %c0_20 = arith.constant 0 : index
    %29 = vector.load %arg1[%28, %c0_19, %c0_20] : memref<8x8x128xf32, #tpu.memory_space<vmem>>, vector<1x8x128xf32>
    %30 = vector.shape_cast %29 : vector<1x8x128xf32> to vector<8x128xf32>
    %c0_21 = arith.constant 0 : index
    %c0_22 = arith.constant 0 : index
    %31 = vector.load %arg2[%c0_21, %c0_22] : memref<256x128xf32, #tpu.memory_space<vmem>>, vector<256x128xf32>
    %32 = tpu.concatenate %30, %21 in 1 : vector<8x128xf32>, vector<8x128xf32> -> vector<8x256xf32>
    %cst_23 = arith.constant dense<0.000000e+00> : vector<8x128xf32>
    %33 = tpu.matmul %32, %31, %cst_23 {dimension_numbers = #tpu.dot_dimension_numbers<[1], [0], [0], [1], [0, 0, 1, 1], [], []>} : vector<8x256xf32>, vector<256x128xf32>, vector<8x128xf32> -> vector<8x128xf32>
    %34 = arith.addf %33, %5 : vector<8x128xf32>
    %cst_24 = arith.constant 0.000000e+00 : f32
    %35 = vector.broadcast %cst_24 : f32 to vector<8x128xf32>
    %36 = arith.maximumf %34, %35 : vector<8x128xf32>
    %c0_25 = arith.constant 0 : index
    %c0_26 = arith.constant 0 : index
    %37 = vector.load %arg4[%c0_25, %c0_26] : memref<256x128xf32, #tpu.memory_space<vmem>>, vector<256x128xf32>
    %38 = tpu.concatenate %36, %27 in 1 : vector<8x128xf32>, vector<8x128xf32> -> vector<8x256xf32>
    %cst_27 = arith.constant dense<0.000000e+00> : vector<8x128xf32>
    %39 = tpu.matmul %38, %37, %cst_27 {dimension_numbers = #tpu.dot_dimension_numbers<[1], [0], [0], [1], [0, 0, 1, 1], [], []>} : vector<8x256xf32>, vector<256x128xf32>, vector<8x128xf32> -> vector<8x128xf32>
    %40 = arith.addf %39, %8 : vector<8x128xf32>
    %cst_28 = arith.constant 0.000000e+00 : f32
    %41 = vector.broadcast %cst_28 : f32 to vector<8x128xf32>
    %42 = arith.maximumf %40, %41 : vector<8x128xf32>
    %c2_i32 = arith.constant 2 : i32
    %43 = arith.index_cast %c2_i32 : i32 to index
    %c0_29 = arith.constant 0 : index
    %c0_30 = arith.constant 0 : index
    %44 = vector.load %arg1[%43, %c0_29, %c0_30] : memref<8x8x128xf32, #tpu.memory_space<vmem>>, vector<1x8x128xf32>
    %45 = vector.shape_cast %44 : vector<1x8x128xf32> to vector<8x128xf32>
    %c0_31 = arith.constant 0 : index
    %c0_32 = arith.constant 0 : index
    %46 = vector.load %arg2[%c0_31, %c0_32] : memref<256x128xf32, #tpu.memory_space<vmem>>, vector<256x128xf32>
    %47 = tpu.concatenate %45, %36 in 1 : vector<8x128xf32>, vector<8x128xf32> -> vector<8x256xf32>
    %cst_33 = arith.constant dense<0.000000e+00> : vector<8x128xf32>
    %48 = tpu.matmul %47, %46, %cst_33 {dimension_numbers = #tpu.dot_dimension_numbers<[1], [0], [0], [1], [0, 0, 1, 1], [], []>} : vector<8x256xf32>, vector<256x128xf32>, vector<8x128xf32> -> vector<8x128xf32>
    %49 = arith.addf %48, %5 : vector<8x128xf32>
    %cst_34 = arith.constant 0.000000e+00 : f32
    %50 = vector.broadcast %cst_34 : f32 to vector<8x128xf32>
    %51 = arith.maximumf %49, %50 : vector<8x128xf32>
    %c0_35 = arith.constant 0 : index
    %c0_36 = arith.constant 0 : index
    %52 = vector.load %arg4[%c0_35, %c0_36] : memref<256x128xf32, #tpu.memory_space<vmem>>, vector<256x128xf32>
    %53 = tpu.concatenate %51, %42 in 1 : vector<8x128xf32>, vector<8x128xf32> -> vector<8x256xf32>
    %cst_37 = arith.constant dense<0.000000e+00> : vector<8x128xf32>
    %54 = tpu.matmul %53, %52, %cst_37 {dimension_numbers = #tpu.dot_dimension_numbers<[1], [0], [0], [1], [0, 0, 1, 1], [], []>} : vector<8x256xf32>, vector<256x128xf32>, vector<8x128xf32> -> vector<8x128xf32>
    %55 = arith.addf %54, %8 : vector<8x128xf32>
    %cst_38 = arith.constant 0.000000e+00 : f32
    %56 = vector.broadcast %cst_38 : f32 to vector<8x128xf32>
    %57 = arith.maximumf %55, %56 : vector<8x128xf32>
    %c3_i32 = arith.constant 3 : i32
    %58 = arith.index_cast %c3_i32 : i32 to index
    %c0_39 = arith.constant 0 : index
    %c0_40 = arith.constant 0 : index
    %59 = vector.load %arg1[%58, %c0_39, %c0_40] : memref<8x8x128xf32, #tpu.memory_space<vmem>>, vector<1x8x128xf32>
    %60 = vector.shape_cast %59 : vector<1x8x128xf32> to vector<8x128xf32>
    %c0_41 = arith.constant 0 : index
    %c0_42 = arith.constant 0 : index
    %61 = vector.load %arg2[%c0_41, %c0_42] : memref<256x128xf32, #tpu.memory_space<vmem>>, vector<256x128xf32>
    %62 = tpu.concatenate %60, %51 in 1 : vector<8x128xf32>, vector<8x128xf32> -> vector<8x256xf32>
    %cst_43 = arith.constant dense<0.000000e+00> : vector<8x128xf32>
    %63 = tpu.matmul %62, %61, %cst_43 {dimension_numbers = #tpu.dot_dimension_numbers<[1], [0], [0], [1], [0, 0, 1, 1], [], []>} : vector<8x256xf32>, vector<256x128xf32>, vector<8x128xf32> -> vector<8x128xf32>
    %64 = arith.addf %63, %5 : vector<8x128xf32>
    %cst_44 = arith.constant 0.000000e+00 : f32
    %65 = vector.broadcast %cst_44 : f32 to vector<8x128xf32>
    %66 = arith.maximumf %64, %65 : vector<8x128xf32>
    %c0_45 = arith.constant 0 : index
    %c0_46 = arith.constant 0 : index
    %67 = vector.load %arg4[%c0_45, %c0_46] : memref<256x128xf32, #tpu.memory_space<vmem>>, vector<256x128xf32>
    %68 = tpu.concatenate %66, %57 in 1 : vector<8x128xf32>, vector<8x128xf32> -> vector<8x256xf32>
    %cst_47 = arith.constant dense<0.000000e+00> : vector<8x128xf32>
    %69 = tpu.matmul %68, %67, %cst_47 {dimension_numbers = #tpu.dot_dimension_numbers<[1], [0], [0], [1], [0, 0, 1, 1], [], []>} : vector<8x256xf32>, vector<256x128xf32>, vector<8x128xf32> -> vector<8x128xf32>
    %70 = arith.addf %69, %8 : vector<8x128xf32>
    %cst_48 = arith.constant 0.000000e+00 : f32
    %71 = vector.broadcast %cst_48 : f32 to vector<8x128xf32>
    %72 = arith.maximumf %70, %71 : vector<8x128xf32>
    %c4_i32 = arith.constant 4 : i32
    %73 = arith.index_cast %c4_i32 : i32 to index
    %c0_49 = arith.constant 0 : index
    %c0_50 = arith.constant 0 : index
    %74 = vector.load %arg1[%73, %c0_49, %c0_50] : memref<8x8x128xf32, #tpu.memory_space<vmem>>, vector<1x8x128xf32>
    %75 = vector.shape_cast %74 : vector<1x8x128xf32> to vector<8x128xf32>
    %c0_51 = arith.constant 0 : index
    %c0_52 = arith.constant 0 : index
    %76 = vector.load %arg2[%c0_51, %c0_52] : memref<256x128xf32, #tpu.memory_space<vmem>>, vector<256x128xf32>
    %77 = tpu.concatenate %75, %66 in 1 : vector<8x128xf32>, vector<8x128xf32> -> vector<8x256xf32>
    %cst_53 = arith.constant dense<0.000000e+00> : vector<8x128xf32>
    %78 = tpu.matmul %77, %76, %cst_53 {dimension_numbers = #tpu.dot_dimension_numbers<[1], [0], [0], [1], [0, 0, 1, 1], [], []>} : vector<8x256xf32>, vector<256x128xf32>, vector<8x128xf32> -> vector<8x128xf32>
    %79 = arith.addf %78, %5 : vector<8x128xf32>
    %cst_54 = arith.constant 0.000000e+00 : f32
    %80 = vector.broadcast %cst_54 : f32 to vector<8x128xf32>
    %81 = arith.maximumf %79, %80 : vector<8x128xf32>
    %c0_55 = arith.constant 0 : index
    %c0_56 = arith.constant 0 : index
    %82 = vector.load %arg4[%c0_55, %c0_56] : memref<256x128xf32, #tpu.memory_space<vmem>>, vector<256x128xf32>
    %83 = tpu.concatenate %81, %72 in 1 : vector<8x128xf32>, vector<8x128xf32> -> vector<8x256xf32>
    %cst_57 = arith.constant dense<0.000000e+00> : vector<8x128xf32>
    %84 = tpu.matmul %83, %82, %cst_57 {dimension_numbers = #tpu.dot_dimension_numbers<[1], [0], [0], [1], [0, 0, 1, 1], [], []>} : vector<8x256xf32>, vector<256x128xf32>, vector<8x128xf32> -> vector<8x128xf32>
    %85 = arith.addf %84, %8 : vector<8x128xf32>
    %cst_58 = arith.constant 0.000000e+00 : f32
    %86 = vector.broadcast %cst_58 : f32 to vector<8x128xf32>
    %87 = arith.maximumf %85, %86 : vector<8x128xf32>
    %c5_i32 = arith.constant 5 : i32
    %88 = arith.index_cast %c5_i32 : i32 to index
    %c0_59 = arith.constant 0 : index
    %c0_60 = arith.constant 0 : index
    %89 = vector.load %arg1[%88, %c0_59, %c0_60] : memref<8x8x128xf32, #tpu.memory_space<vmem>>, vector<1x8x128xf32>
    %90 = vector.shape_cast %89 : vector<1x8x128xf32> to vector<8x128xf32>
    %c0_61 = arith.constant 0 : index
    %c0_62 = arith.constant 0 : index
    %91 = vector.load %arg2[%c0_61, %c0_62] : memref<256x128xf32, #tpu.memory_space<vmem>>, vector<256x128xf32>
    %92 = tpu.concatenate %90, %81 in 1 : vector<8x128xf32>, vector<8x128xf32> -> vector<8x256xf32>
    %cst_63 = arith.constant dense<0.000000e+00> : vector<8x128xf32>
    %93 = tpu.matmul %92, %91, %cst_63 {dimension_numbers = #tpu.dot_dimension_numbers<[1], [0], [0], [1], [0, 0, 1, 1], [], []>} : vector<8x256xf32>, vector<256x128xf32>, vector<8x128xf32> -> vector<8x128xf32>
    %94 = arith.addf %93, %5 : vector<8x128xf32>
    %cst_64 = arith.constant 0.000000e+00 : f32
    %95 = vector.broadcast %cst_64 : f32 to vector<8x128xf32>
    %96 = arith.maximumf %94, %95 : vector<8x128xf32>
    %c0_65 = arith.constant 0 : index
    %c0_66 = arith.constant 0 : index
    %97 = vector.load %arg4[%c0_65, %c0_66] : memref<256x128xf32, #tpu.memory_space<vmem>>, vector<256x128xf32>
    %98 = tpu.concatenate %96, %87 in 1 : vector<8x128xf32>, vector<8x128xf32> -> vector<8x256xf32>
    %cst_67 = arith.constant dense<0.000000e+00> : vector<8x128xf32>
    %99 = tpu.matmul %98, %97, %cst_67 {dimension_numbers = #tpu.dot_dimension_numbers<[1], [0], [0], [1], [0, 0, 1, 1], [], []>} : vector<8x256xf32>, vector<256x128xf32>, vector<8x128xf32> -> vector<8x128xf32>
    %100 = arith.addf %99, %8 : vector<8x128xf32>
    %cst_68 = arith.constant 0.000000e+00 : f32
    %101 = vector.broadcast %cst_68 : f32 to vector<8x128xf32>
    %102 = arith.maximumf %100, %101 : vector<8x128xf32>
    %c6_i32 = arith.constant 6 : i32
    %103 = arith.index_cast %c6_i32 : i32 to index
    %c0_69 = arith.constant 0 : index
    %c0_70 = arith.constant 0 : index
    %104 = vector.load %arg1[%103, %c0_69, %c0_70] : memref<8x8x128xf32, #tpu.memory_space<vmem>>, vector<1x8x128xf32>
    %105 = vector.shape_cast %104 : vector<1x8x128xf32> to vector<8x128xf32>
    %c0_71 = arith.constant 0 : index
    %c0_72 = arith.constant 0 : index
    %106 = vector.load %arg2[%c0_71, %c0_72] : memref<256x128xf32, #tpu.memory_space<vmem>>, vector<256x128xf32>
    %107 = tpu.concatenate %105, %96 in 1 : vector<8x128xf32>, vector<8x128xf32> -> vector<8x256xf32>
    %cst_73 = arith.constant dense<0.000000e+00> : vector<8x128xf32>
    %108 = tpu.matmul %107, %106, %cst_73 {dimension_numbers = #tpu.dot_dimension_numbers<[1], [0], [0], [1], [0, 0, 1, 1], [], []>} : vector<8x256xf32>, vector<256x128xf32>, vector<8x128xf32> -> vector<8x128xf32>
    %109 = arith.addf %108, %5 : vector<8x128xf32>
    %cst_74 = arith.constant 0.000000e+00 : f32
    %110 = vector.broadcast %cst_74 : f32 to vector<8x128xf32>
    %111 = arith.maximumf %109, %110 : vector<8x128xf32>
    %c0_75 = arith.constant 0 : index
    %c0_76 = arith.constant 0 : index
    %112 = vector.load %arg4[%c0_75, %c0_76] : memref<256x128xf32, #tpu.memory_space<vmem>>, vector<256x128xf32>
    %113 = tpu.concatenate %111, %102 in 1 : vector<8x128xf32>, vector<8x128xf32> -> vector<8x256xf32>
    %cst_77 = arith.constant dense<0.000000e+00> : vector<8x128xf32>
    %114 = tpu.matmul %113, %112, %cst_77 {dimension_numbers = #tpu.dot_dimension_numbers<[1], [0], [0], [1], [0, 0, 1, 1], [], []>} : vector<8x256xf32>, vector<256x128xf32>, vector<8x128xf32> -> vector<8x128xf32>
    %115 = arith.addf %114, %8 : vector<8x128xf32>
    %cst_78 = arith.constant 0.000000e+00 : f32
    %116 = vector.broadcast %cst_78 : f32 to vector<8x128xf32>
    %117 = arith.maximumf %115, %116 : vector<8x128xf32>
    %c7_i32 = arith.constant 7 : i32
    %118 = arith.index_cast %c7_i32 : i32 to index
    %c0_79 = arith.constant 0 : index
    %c0_80 = arith.constant 0 : index
    %119 = vector.load %arg1[%118, %c0_79, %c0_80] : memref<8x8x128xf32, #tpu.memory_space<vmem>>, vector<1x8x128xf32>
    %120 = vector.shape_cast %119 : vector<1x8x128xf32> to vector<8x128xf32>
    %c0_81 = arith.constant 0 : index
    %c0_82 = arith.constant 0 : index
    %121 = vector.load %arg2[%c0_81, %c0_82] : memref<256x128xf32, #tpu.memory_space<vmem>>, vector<256x128xf32>
    %122 = tpu.concatenate %120, %111 in 1 : vector<8x128xf32>, vector<8x128xf32> -> vector<8x256xf32>
    %cst_83 = arith.constant dense<0.000000e+00> : vector<8x128xf32>
    %123 = tpu.matmul %122, %121, %cst_83 {dimension_numbers = #tpu.dot_dimension_numbers<[1], [0], [0], [1], [0, 0, 1, 1], [], []>} : vector<8x256xf32>, vector<256x128xf32>, vector<8x128xf32> -> vector<8x128xf32>
    %124 = arith.addf %123, %5 : vector<8x128xf32>
    %cst_84 = arith.constant 0.000000e+00 : f32
    %125 = vector.broadcast %cst_84 : f32 to vector<8x128xf32>
    %126 = arith.maximumf %124, %125 : vector<8x128xf32>
    %c0_85 = arith.constant 0 : index
    %c0_86 = arith.constant 0 : index
    %127 = vector.load %arg4[%c0_85, %c0_86] : memref<256x128xf32, #tpu.memory_space<vmem>>, vector<256x128xf32>
    %128 = tpu.concatenate %126, %117 in 1 : vector<8x128xf32>, vector<8x128xf32> -> vector<8x256xf32>
    %cst_87 = arith.constant dense<0.000000e+00> : vector<8x128xf32>
    %129 = tpu.matmul %128, %127, %cst_87 {dimension_numbers = #tpu.dot_dimension_numbers<[1], [0], [0], [1], [0, 0, 1, 1], [], []>} : vector<8x256xf32>, vector<256x128xf32>, vector<8x128xf32> -> vector<8x128xf32>
    %130 = arith.addf %129, %8 : vector<8x128xf32>
    %cst_88 = arith.constant 0.000000e+00 : f32
    %131 = vector.broadcast %cst_88 : f32 to vector<8x128xf32>
    %132 = arith.maximumf %130, %131 : vector<8x128xf32>
    %c8_i32 = arith.constant 8 : i32
    %c0_89 = arith.constant 0 : index
    %c0_90 = arith.constant 0 : index
    %c0_91 = arith.constant 0 : index
    %133 = vector.load %arg9[%c0_89, %c0_90, %c0_91] : memref<2x8x128xf32, #tpu.memory_space<vmem>>, vector<1x8x128xf32>
    %134 = vector.shape_cast %133 : vector<1x8x128xf32> to vector<8x128xf32>
    %135 = vector.shape_cast %126 : vector<8x128xf32> to vector<1x8x128xf32>
    tpu.vector_store %arg9[%c0_89, %c0_90, %c0_91], %135 {strides = array<i32>} : memref<2x8x128xf32, #tpu.memory_space<vmem>>, vector<1x8x128xf32>,
    %c1_92 = arith.constant 1 : index
    %c0_93 = arith.constant 0 : index
    %c0_94 = arith.constant 0 : index
    %136 = vector.load %arg9[%c1_92, %c0_93, %c0_94] : memref<2x8x128xf32, #tpu.memory_space<vmem>>, vector<1x8x128xf32>
    %137 = vector.shape_cast %136 : vector<1x8x128xf32> to vector<8x128xf32>
    %138 = vector.shape_cast %132 : vector<8x128xf32> to vector<1x8x128xf32>
    tpu.vector_store %arg9[%c1_92, %c0_93, %c0_94], %138 {strides = array<i32>} : memref<2x8x128xf32, #tpu.memory_space<vmem>>, vector<1x8x128xf32>,
    %c0_i32_95 = arith.constant 0 : i32
    %139 = arith.cmpi eq, %arg0, %c0_i32_95 : i32
    %140 = arith.extui %139 : i1 to i32
    %c0_i32_96 = arith.constant 0 : i32
    %141 = arith.cmpi ne, %140, %c0_i32_96 : i32
    scf.if %141 {
      %c0_97 = arith.constant 0 : index
      %c0_98 = arith.constant 0 : index
      %142 = vector.load %arg6[%c0_97, %c0_98] : memref<128x128xf32, #tpu.memory_space<vmem>>, vector<128x128xf32>
      %cst_99 = arith.constant dense<0.000000e+00> : vector<8x128xf32>
      %143 = tpu.matmul %132, %142, %cst_99 {dimension_numbers = #tpu.dot_dimension_numbers<[1], [0], [0], [1], [0, 0, 1, 1], [], []>} : vector<8x128xf32>, vector<128x128xf32>, vector<8x128xf32> -> vector<8x128xf32>
      %c0_100 = arith.constant 0 : index
      %c0_101 = arith.constant 0 : index
      %144 = vector.load %arg7[%c0_100, %c0_101] : memref<1x128xf32, #tpu.memory_space<vmem>>, vector<1x128xf32>
      %145 = vector.broadcast %144 : vector<1x128xf32> to vector<8x128xf32>
      %146 = arith.addf %143, %145 : vector<8x128xf32>
      %c0_102 = arith.constant 0 : index
      %c0_103 = arith.constant 0 : index
      %147 = vector.load %arg8[%c0_102, %c0_103] : memref<8x128xf32, #tpu.memory_space<vmem>>, vector<8x128xf32>
      tpu.vector_store %arg8[%c0_102, %c0_103], %146 {strides = array<i32>} : memref<8x128xf32, #tpu.memory_space<vmem>>, vector<8x128xf32>,
    } else {
    }
    return
  }
  func.func @transform_0(%arg0: i32) -> (i32, i32, i32) {
    %c0_i32 = arith.constant 0 : i32
    %c0_i32_0 = arith.constant 0 : i32
    %c0_i32_1 = arith.constant 0 : i32
    return %arg0, %c0_i32, %c0_i32_0 : i32, i32, i32
  }
  func.func @transform_1(%arg0: i32) -> (i32, i32) {
    %c0_i32 = arith.constant 0 : i32
    %c0_i32_0 = arith.constant 0 : i32
    %c0_i32_1 = arith.constant 0 : i32
    return %c0_i32, %c0_i32_0 : i32, i32
  }
  func.func @transform_2(%arg0: i32) -> (i32, i32) {
    %c0_i32 = arith.constant 0 : i32
    %c0_i32_0 = arith.constant 0 : i32
    %c0_i32_1 = arith.constant 0 : i32
    return %c0_i32, %c0_i32_0 : i32, i32
  }
  func.func @transform_3(%arg0: i32) -> (i32, i32) {
    %c0_i32 = arith.constant 0 : i32
    %c0_i32_0 = arith.constant 0 : i32
    %c0_i32_1 = arith.constant 0 : i32
    return %c0_i32, %c0_i32_0 : i32, i32
  }
  func.func @transform_4(%arg0: i32) -> (i32, i32) {
    %c0_i32 = arith.constant 0 : i32
    %c0_i32_0 = arith.constant 0 : i32
    %c0_i32_1 = arith.constant 0 : i32
    return %c0_i32, %c0_i32_0 : i32, i32
  }
  func.func @transform_5(%arg0: i32) -> (i32, i32) {
    %c0_i32 = arith.constant 0 : i32
    %c0_i32_0 = arith.constant 0 : i32
    %c0_i32_1 = arith.constant 0 : i32
    return %c0_i32, %c0_i32_0 : i32, i32
  }
  func.func @transform_6(%arg0: i32) -> (i32, i32) {
    %c0_i32 = arith.constant 0 : i32
    %c0_i32_0 = arith.constant 0 : i32
    %c0_i32_1 = arith.constant 0 : i32
    return %c0_i32, %c0_i32_0 : i32, i32
  }
  func.func @transform_7(%arg0: i32) -> (i32, i32) {
    %c0_i32 = arith.constant 0 : i32
    %c0_i32_0 = arith.constant 0 : i32
    %c0_i32_1 = arith.constant 0 : i32
    return %c0_i32, %c0_i32_0 : i32, i32
  }
}

</mosaic_0001>

<bundles_post_ra>
// kernel: tpu_custom_call.1
= control target key start
LH: loop header
LB: loop body
LE: loop exit
PB: predicated region body
PF: predicated region fallthrough
CT: control target
= control target key end

     0   :  { %12 = vsyncpa [#allocation4], 0  ;;  %s1796_s0 = inlined_call_operand.hbm [shape: f32[8,8,128], index: 0, kind: input, shape index: {}]   ;;  %s1797_s1 = inlined_call_operand.hbm [shape: f32[256,128], index: 1, kind: input, shape index: {}]   ;;  %s1798_s2 = inlined_call_operand.vmem [shape: f32[1,128], index: 2, kind: input, shape index: {}]   ;;  %s1799_s3 = inlined_call_operand.hbm [shape: f32[256,128], index: 3, kind: input, shape index: {}]   ;;  %s1800_s4 = inlined_call_operand.vmem [shape: f32[1,128], index: 4, kind: input, shape index: {}]   ;;  %s1801_s5 = inlined_call_operand.hbm [shape: f32[128,128], index: 5, kind: input, shape index: {}]   ;;  %s1802_s6 = inlined_call_operand.vmem [shape: f32[1,128], index: 6, kind: input, shape index: {}]   ;;  %s1803_s7 = inlined_call_operand.hbm [shape: f32[8,128], index: 7, kind: output, shape index: {}]  }
   0x1   :  { %13 = vsyncpa [#allocation7], 0 }
   0x2   :  { %14 = vsyncpa [#allocation10], 0 }
   0x3   :  { %15 = vsyncpa [#allocation5], 0  ;;  %s33_s26 = sshll.u32 %s1797_s1, 4  ;;  %s1094_s27 = smov [#allocation6]   ;;  %s34_s26 = int_to_ptr.hbm [resolvable:$true] %s33_s26 }
   0x4   :  { %s35_s28 = sshll.u32 %s1094_s27, 4  ;;  %s20_s8 = sshll.u32 %s1796_s0, 4  ;;  %s36_s28 = int_to_ptr.vmem [resolvable:$true] %s35_s28  ;;  %s21_s8 = int_to_ptr.hbm [resolvable:$true] %s20_s8 }
   0x5   :  { %s1095_s9 = smov 128   ;;  %s1096_s10 = smov 8  }
   0x6   :  { %41 = dma.hbm_to_vmem [thread:$0]  %s34_s26, 4096, %s36_s28, [#allocation7], %s1095_s9, %s1095_s9, %s1096_s10  }
   0x7   :  { %s1097_s11 = smov [#allocation3]   ;;  %s48_s15 = sshll.u32 %s1799_s3, 4  ;;  %s49_s15 = int_to_ptr.hbm [resolvable:$true] %s48_s15 }
   0x8   :  { %s22_s12 = sshll.u32 %s1097_s11, 4  ;;  %s63_s17 = sshll.u32 %s1801_s5, 4  ;;  %s23_s12 = int_to_ptr.vmem [resolvable:$true] %s22_s12  ;;  %s64_s17 = int_to_ptr.hbm [resolvable:$true] %s63_s17 }
   0x9   :  { %28 = dma.hbm_to_vmem [thread:$0]  %s21_s8, 1024, %s23_s12, [#allocation4], %s1095_s9, %s1095_s9, %s1096_s10  }
   0xa   :  { %s1098_s18 = smov [#allocation8]   ;;  %s1099_s0 = smov [#allocation9]  }
   0xb   :  { %s50_s19 = sshll.u32 %s1098_s18, 4  ;;  %s65_s20 = sshll.u32 %s1099_s0, 4  ;;  %s51_s19 = int_to_ptr.vmem [resolvable:$true] %s50_s19  ;;  %s66_s20 = int_to_ptr.vmem [resolvable:$true] %s65_s20 }
   0xc   :  { %56 = dma.hbm_to_vmem [thread:$0]  %s49_s15, 4096, %s51_s19, [#allocation7], %s1095_s9, %s1095_s9, %s1096_s10  }
   0xd   :  { %71 = dma.hbm_to_vmem [thread:$0]  %s64_s17, 2048, %s66_s20, [#allocation10], %s1095_s9, %s1095_s9, %s1096_s10  }
   0xe   :  { %1086 = dma.done.wait [#allocation4], 1024  }
   0xf   :  { %1087 = vsyncadd [#allocation4], 4294966272 }
  0x10   :  { %1088 = dma.done.wait [#allocation7], 8192  }
  0x11   :  { %1089 = vsyncadd [#allocation7], 4294959104 }
  0x12   :  { %1090 = dma.done.wait [#allocation10], 2048  }
  0x13   :  { %1091 = vsyncadd [#allocation10], 4294965248  ;;  %v1154_v0 = vld [vmem:[#allocation6 + $0x78] sm:$0xff]  ;;  %v1156_v1 = vld [vmem:[#allocation6 + $0x70] sm:$0xff]  ;;  %v1804_v55 = vmov 0.0   ;;  %s1101_s23 = smov [#allocation11]  }
  0x14   :  { %1836 = vst [vmem:[#allocation16_spill] sm:$0xff] %v1154_v0  ;;  %v1158_v2 = vld [vmem:[#allocation6 + $0xf8] sm:$0xff]  ;;  %140 = vmatpush.msra.mxu0 %v1154_v0  ;;  %v1162_v3 = vld [vmem:[#allocation6 + $0xf0] sm:$0xff]  ;;  %v1164_v4 = vld [vmem:[#allocation6 + $0x68] sm:$0xff]  ;;  %s893_s24 = sshll.u32 %s1101_s23, 4  ;;  %s895_s27 = sshll.u32 %s1803_s7, 4  ;;  %s894_s24 = int_to_ptr.vmem [resolvable:$true] %s893_s24  ;;  %s896_s27 = int_to_ptr.hbm [resolvable:$true] %s895_s27 }
  0x15   :  { %1837 = vst [vmem:[#allocation17_spill] sm:$0xff] %v1156_v1  ;;  %160 = vmatpush.msra.mxu1 %v1158_v2  ;;  %v1166_v5 = vld [vmem:[#allocation6 + $0xe8] sm:$0xff]  ;;  %v1170_v6 = vld [vmem:[#allocation6 + $0x60] sm:$0xff]  ;;  %v1176_v8 = vld [vmem:[#allocation6 + $0x58] sm:$0xff] }
  0x16   :  { %1838 = vst [vmem:[#allocation18_spill] sm:$0xff] %v1164_v4  ;;  %141 = vmatpush.msra.mxu0 %v1156_v1  ;;  %v1172_v7 = vld [vmem:[#allocation6 + $0xe0] sm:$0xff]  ;;  %v1178_v9 = vld [vmem:[#allocation6 + $0xd8] sm:$0xff]  ;;  %v1182_v10 = vld [vmem:[#allocation6 + $0x50] sm:$0xff] }
  0x17   :  { %161 = vmatpush.msra.mxu1 %v1162_v3  ;;  %1839 = vst [vmem:[#allocation19_spill] sm:$0xff] %v1170_v6  ;;  %v1184_v11 = vld [vmem:[#allocation6 + $0xd0] sm:$0xff]  ;;  %v1188_v12 = vld [vmem:[#allocation6 + $0x48] sm:$0xff]  ;;  %v1194_v14 = vld [vmem:[#allocation8 + $0x78] sm:$0xff] }
  0x18   :  { %142 = vmatpush.msra.mxu0 %v1164_v4  ;;  %1840 = vst [vmem:[#allocation20_spill] sm:$0xff] %v1182_v10  ;;  %v1190_v13 = vld [vmem:[#allocation6 + $0xc8] sm:$0xff]  ;;  %v1196_v15 = vld [vmem:[#allocation8 + $0x70] sm:$0xff]  ;;  %v1198_v16 = vld [vmem:[#allocation8 + $0xf8] sm:$0xff]  ;;  %213 = vmatpush.msra.mxu2 %v1194_v14 }
  0x19   :  { %162 = vmatpush.msra.mxu1 %v1166_v5  ;;  %1841 = vst [vmem:[#allocation21_spill] sm:$0xff] %v1188_v12  ;;  %v1200_v17 = vld [vmem:[#allocation6 + $0x40] sm:$0xff]  ;;  %233 = vmatpush.msra.mxu3 %v1198_v16  ;;  %v1206_v19 = vld [vmem:[#allocation8 + $0xf0] sm:$0xff]  ;;  %v1210_v20 = vld [vmem:[#allocation8 + $0x68] sm:$0xff] }
  0x1a   :  { %143 = vmatpush.msra.mxu0 %v1170_v6  ;;  %v1202_v18 = vld [vmem:[#allocation6 + $0xc0] sm:$0xff]  ;;  %v1212_v21 = vld [vmem:[#allocation8 + $0xe8] sm:$0xff]  ;;  %v1214_v22 = vld [vmem:[#allocation6 + $0x38] sm:$0xff]  ;;  %214 = vmatpush.msra.mxu2 %v1196_v15 }
  0x1b   :  { %163 = vmatpush.msra.mxu1 %v1172_v7  ;;  %1842 = vst [vmem:[#allocation22_spill] sm:$0xff] %v1214_v22  ;;  %v1216_v23 = vld [vmem:[#allocation6 + $0x30] sm:$0xff]  ;;  %v1218_v24 = vld [vmem:[#allocation6 + $0xb8] sm:$0xff]  ;;  %234 = vmatpush.msra.mxu3 %v1206_v19  ;;  %v1226_v26 = vld [vmem:[#allocation8 + $0x60] sm:$0xff] }
  0x1c   :  { %144 = vmatpush.msra.mxu0 %v1176_v8  ;;  %1843 = vst [vmem:[#allocation23_spill] sm:$0xff] %v1216_v23  ;;  %v1224_v25 = vld [vmem:[#allocation6 + $0xb0] sm:$0xff]  ;;  %v1228_v27 = vld [vmem:[#allocation8 + $0xe0] sm:$0xff]  ;;  %215 = vmatpush.msra.mxu2 %v1210_v20  ;;  %v1234_v28 = vld [vmem:[#allocation8 + $0x58] sm:$0xff] }
  0x1d   :  { %164 = vmatpush.msra.mxu1 %v1178_v9  ;;  %235 = vmatpush.msra.mxu3 %v1212_v21  ;;  %v1236_v29 = vld [vmem:[#allocation8 + $0xd8] sm:$0xff]  ;;  %v1238_v30 = vld [vmem:[#allocation6 + $0x28] sm:$0xff]  ;;  %v1246_v32 = vld [vmem:[#allocation8 + $0x50] sm:$0xff] }
  0x1e   :  { %145 = vmatpush.msra.mxu0 %v1182_v10  ;;  %1844 = vst [vmem:[#allocation24_spill] sm:$0xff] %v1238_v30  ;;  %v1240_v31 = vld [vmem:[#allocation6 + $0xa8] sm:$0xff]  ;;  %216 = vmatpush.msra.mxu2 %v1226_v26  ;;  %v1248_v33 = vld [vmem:[#allocation8 + $0xd0] sm:$0xff]  ;;  %v1250_v34 = vld [vmem:[#allocation6 + $0x20] sm:$0xff] }
  0x1f   :  { %165 = vmatpush.msra.mxu1 %v1184_v11  ;;  %236 = vmatpush.msra.mxu3 %v1228_v27  ;;  %1845 = vst [vmem:[#allocation25_spill] sm:$0xff] %v1250_v34  ;;  %v1252_v35 = vld [vmem:[#allocation6 + $0xa0] sm:$0xff]  ;;  %v1258_v36 = vld [vmem:[#allocation8 + $0x48] sm:$0xff]  ;;  %v1262_v38 = vld [vmem:[#allocation6 + $0x18] sm:$0xff] }
  0x20   :  { %146 = vmatpush.msra.mxu0 %v1188_v12  ;;  %217 = vmatpush.msra.mxu2 %v1234_v28  ;;  %v1260_v37 = vld [vmem:[#allocation8 + $0xc8] sm:$0xff]  ;;  %1846 = vst [vmem:[#allocation26_spill] sm:$0xff] %v1262_v38  ;;  %v1264_v39 = vld [vmem:[#allocation6 + $0x98] sm:$0xff]  ;;  %v1270_v40 = vld [vmem:[#allocation8 + $0x40] sm:$0xff] }
  0x21   :  { %166 = vmatpush.msra.mxu1 %v1190_v13  ;;  %237 = vmatpush.msra.mxu3 %v1236_v29  ;;  %v1272_v41 = vld [vmem:[#allocation8 + $0xc0] sm:$0xff]  ;;  %v1274_v42 = vld [vmem:[#allocation6 + $0x10] sm:$0xff]  ;;  %v1282_v44 = vld [vmem:[#allocation8 + $0x38] sm:$0xff] }
  0x22   :  { %147 = vmatpush.msra.mxu0 %v1200_v17  ;;  %218 = vmatpush.msra.mxu2 %v1246_v32  ;;  %v1276_v43 = vld [vmem:[#allocation6 + $0x90] sm:$0xff]  ;;  %v1284_v45 = vld [vmem:[#allocation8 + $0xb8] sm:$0xff]  ;;  %v1286_v46 = vld [vmem:[#allocation6 + $0x8] sm:$0xff] }
  0x23   :  { %167 = vmatpush.msra.mxu1 %v1202_v18  ;;  %238 = vmatpush.msra.mxu3 %v1248_v33  ;;  %v1288_v47 = vld [vmem:[#allocation6 + $0x88] sm:$0xff]  ;;  %v1294_v48 = vld [vmem:[#allocation8 + $0x30] sm:$0xff]  ;;  %v1298_v50 = vld [vmem:[#allocation6] sm:$0xff] }
  0x24   :  { %148 = vmatpush.msra.mxu0 %v1214_v22  ;;  %219 = vmatpush.msra.mxu2 %v1258_v36  ;;  %1847 = vst [vmem:[#allocation27_spill] sm:$0xff] %v1288_v47  ;;  %v1296_v49 = vld [vmem:[#allocation8 + $0xb0] sm:$0xff]  ;;  %v1300_v51 = vld [vmem:[#allocation6 + $0x80] sm:$0xff]  ;;  %v1310_v53 = vld [vmem:[#allocation8 + $0x28] sm:$0xff] }
  0x25   :  { %168 = vmatpush.msra.mxu1 %v1218_v24  ;;  %239 = vmatpush.msra.mxu3 %v1260_v37  ;;  %1848 = vst [vmem:[#allocation28_spill] sm:$0xff] %v1300_v51  ;;  %v107_v52 = vld [vmem:[#allocation3] sm:$0xff]  ;;  %v1312_v54 = vld [vmem:[#allocation8 + $0xa8] sm:$0xff]  ;;  %v1384_v57 = vld [vmem:[#allocation8 + $0x18] sm:$0xff] }
  0x26   :  { %149 = vmatpush.msra.mxu0 %v1216_v23  ;;  %220 = vmatpush.msra.mxu2 %v1270_v40  ;;  %v1317_v56 = vld [vmem:[#allocation8 + $0x20] sm:$0xff]  ;;  %v1390_v59 = vld [vmem:[#allocation8 + $0x10] sm:$0xff]  ;;  %v1392_v60 = vld [vmem:[#allocation8 + $0x98] sm:$0xff] }
  0x27   :  { %169 = vmatpush.msra.mxu1 %v1224_v25  ;;  %240 = vmatpush.msra.mxu3 %v1272_v41  ;;  %v1386_v58 = vld [vmem:[#allocation8 + $0xa0] sm:$0xff]  ;;  %1850 = vst [vmem:[#allocation30_spill] sm:$0xff] %v1392_v60  ;;  %v1396_v61 = vld [vmem:[#allocation8 + $0x8] sm:$0xff]  ;;  %v1398_v62 = vld [vmem:[#allocation8 + $0x90] sm:$0xff] }
  0x28   :  { %150 = vmatpush.msra.mxu0 %v1238_v30  ;;  %221 = vmatpush.msra.mxu2 %v1282_v44  ;;  %1849 = vst [vmem:[#allocation29_spill] sm:$0xff] %v1386_v58  ;;  %v255_v63 = vld [vmem:[#allocation3 + $0x8] sm:$0xff] }
  0x29   :  { %170 = vmatpush.msra.mxu1 %v1240_v31  ;;  %241 = vmatpush.msra.mxu3 %v1284_v45 }
  0x2a   :  { %151 = vmatpush.msra.mxu0 %v1250_v34  ;;  %222 = vmatpush.msra.mxu2 %v1294_v48 }
  0x2b   :  { %171 = vmatpush.msra.mxu1 %v1252_v35  ;;  %242 = vmatpush.msra.mxu3 %v1296_v49 }
  0x2c   :  { %152 = vmatpush.msra.mxu0 %v1262_v38  ;;  %223 = vmatpush.msra.mxu2 %v1310_v53 }
  0x2d   :  { %172 = vmatpush.msra.mxu1 %v1264_v39  ;;  %243 = vmatpush.msra.mxu3 %v1312_v54 }
  0x2e   :  { %153 = vmatpush.msra.mxu0 %v1274_v42  ;;  %224 = vmatpush.msra.mxu2 %v1317_v56 }
  0x2f   :  { %173 = vmatpush.msra.mxu1 %v1276_v43  ;;  %244 = vmatpush.msra.mxu3 %v1386_v58 }
  0x30   :  { %154 = vmatpush.msra.mxu0 %v1286_v46  ;;  %225 = vmatpush.msra.mxu2 %v1384_v57 }
  0x31   :  { %174 = vmatpush.msra.mxu1 %v1288_v47  ;;  %245 = vmatpush.msra.mxu3 %v1392_v60 }
  0x32   :  { %155 = vmatpush.msra.mxu0 %v1298_v50  ;;  %226 = vmatpush.msra.mxu2 %v1390_v59 }
  0x33   :  { %175 = vmatpush.msra.mxu1 %v1300_v51  ;;  %156 = vmatmul.f32.vlgmr.msra.gmra.mxu0 %v107_v52  ;;  %v1402_v52 = vld [vmem:[#allocation8] sm:$0xff] }
  0x34   :  { %176 = vmatmul.f32.vlgmr.msra.gmra.mxu1 %v1804_v55  ;;  %256 = vmatpush.msrb.mxu0 %v1154_v0  ;;  %v1404_v55 = vld [vmem:[#allocation8 + $0x88] sm:$0xff] }
  0x35   :  { %276 = vmatpush.msrb.mxu1 %v1158_v2  ;;  %227 = vmatpush.msra.mxu2 %v1396_v61  ;;  %1851 = vst [vmem:[#allocation31_spill] sm:$0xff] %v1404_v55 }
  0x36   :  { %257 = vmatpush.msrb.mxu0 %v1156_v1  ;;  %246 = vmatpush.msra.mxu3 %v1398_v62 }
  0x37   :  { %277 = vmatpush.msrb.mxu1 %v1162_v3  ;;  %228 = vmatpush.msra.mxu2 %v1402_v52 }
  0x38   :  { %258 = vmatpush.msrb.mxu0 %v1164_v4  ;;  %247 = vmatpush.msra.mxu3 %v1404_v55 }
  0x39   :  { %278 = vmatpush.msrb.mxu1 %v1166_v5  ;;  %297 = vmatpush.msrb.mxu2 %v1194_v14 }
  0x3a   :  { %259 = vmatpush.msrb.mxu0 %v1170_v6 }
  0x3b   :  { %279 = vmatpush.msrb.mxu1 %v1172_v7  ;;  %298 = vmatpush.msrb.mxu2 %v1196_v15 }
  0x3c   :  { %260 = vmatpush.msrb.mxu0 %v1176_v8 }
  0x3d   :  { %280 = vmatpush.msrb.mxu1 %v1178_v9  ;;  %299 = vmatpush.msrb.mxu2 %v1210_v20 }
  0x3e   :  { %261 = vmatpush.msrb.mxu0 %v1182_v10 }
  0x3f   :  { %281 = vmatpush.msrb.mxu1 %v1184_v11  ;;  %300 = vmatpush.msrb.mxu2 %v1226_v26 }
  0x40   :  { %262 = vmatpush.msrb.mxu0 %v1188_v12 }
  0x41   :  { %282 = vmatpush.msrb.mxu1 %v1190_v13  ;;  %301 = vmatpush.msrb.mxu2 %v1234_v28 }
  0x42   :  { %263 = vmatpush.msrb.mxu0 %v1200_v17 }
  0x43   :  { %283 = vmatpush.msrb.mxu1 %v1202_v18  ;;  %302 = vmatpush.msrb.mxu2 %v1246_v32 }
  0x44   :  { %264 = vmatpush.msrb.mxu0 %v1214_v22 }
  0x45   :  { %284 = vmatpush.msrb.mxu1 %v1218_v24  ;;  %303 = vmatpush.msrb.mxu2 %v1258_v36 }
  0x46   :  { %265 = vmatpush.msrb.mxu0 %v1216_v23 }
  0x47   :  { %285 = vmatpush.msrb.mxu1 %v1224_v25  ;;  %304 = vmatpush.msrb.mxu2 %v1270_v40 }
  0x48   :  { %266 = vmatpush.msrb.mxu0 %v1238_v30 }
  0x49   :  { %286 = vmatpush.msrb.mxu1 %v1240_v31  ;;  %305 = vmatpush.msrb.mxu2 %v1282_v44 }
  0x4a   :  { %267 = vmatpush.msrb.mxu0 %v1250_v34 }
  0x4b   :  { %287 = vmatpush.msrb.mxu1 %v1252_v35  ;;  %306 = vmatpush.msrb.mxu2 %v1294_v48 }
  0x4c   :  { %268 = vmatpush.msrb.mxu0 %v1262_v38 }
  0x4d   :  { %288 = vmatpush.msrb.mxu1 %v1264_v39  ;;  %307 = vmatpush.msrb.mxu2 %v1310_v53 }
  0x4e   :  { %269 = vmatpush.msrb.mxu0 %v1274_v42 }
  0x4f   :  { %289 = vmatpush.msrb.mxu1 %v1276_v43  ;;  %308 = vmatpush.msrb.mxu2 %v1317_v56 }
  0x50   :  { %270 = vmatpush.msrb.mxu0 %v1286_v46 }
  0x51   :  { %290 = vmatpush.msrb.mxu1 %v1288_v47  ;;  %309 = vmatpush.msrb.mxu2 %v1384_v57 }
  0x52   :  { %271 = vmatpush.msrb.mxu0 %v1298_v50 }
  0x53   :  { %291 = vmatpush.msrb.mxu1 %v1300_v51  ;;  %272 = vmatmul.f32.vlgmr.msrb.gmra.mxu0 %v255_v63 }
  0x54   :  { %340 = vmatpush.msra.mxu0 %v1154_v0  ;;  %310 = vmatpush.msrb.mxu2 %v1390_v59 }
  0x55   :  { %360 = vmatpush.msra.mxu1 %v1158_v2 }
  0x56   :  { %341 = vmatpush.msra.mxu0 %v1156_v1  ;;  %311 = vmatpush.msrb.mxu2 %v1396_v61 }
  0x57   :  { %361 = vmatpush.msra.mxu1 %v1162_v3 }
  0x58   :  { %342 = vmatpush.msra.mxu0 %v1164_v4  ;;  %312 = vmatpush.msrb.mxu2 %v1402_v52 }
  0x59   :  { %362 = vmatpush.msra.mxu1 %v1166_v5 }
  0x5a   :  { %343 = vmatpush.msra.mxu0 %v1170_v6 }
  0x5b   :  { %363 = vmatpush.msra.mxu1 %v1172_v7 }
  0x5c   :  { %344 = vmatpush.msra.mxu0 %v1176_v8 }
  0x5d   :  { %364 = vmatpush.msra.mxu1 %v1178_v9 }
  0x5e   :  { %345 = vmatpush.msra.mxu0 %v1182_v10 }
  0x5f   :  { %365 = vmatpush.msra.mxu1 %v1184_v11 }
  0x60   :  { %346 = vmatpush.msra.mxu0 %v1188_v12 }
  0x61   :  { %366 = vmatpush.msra.mxu1 %v1190_v13 }
  0x62   :  { %347 = vmatpush.msra.mxu0 %v1200_v17 }
  0x63   :  { %367 = vmatpush.msra.mxu1 %v1202_v18 }
  0x64   :  { %348 = vmatpush.msra.mxu0 %v1214_v22 }
  0x65   :  { %368 = vmatpush.msra.mxu1 %v1218_v24 }
  0x66   :  { %349 = vmatpush.msra.mxu0 %v1216_v23 }
  0x67   :  { %369 = vmatpush.msra.mxu1 %v1224_v25 }
  0x68   :  { %350 = vmatpush.msra.mxu0 %v1238_v30 }
  0x69   :  { %370 = vmatpush.msra.mxu1 %v1240_v31 }
  0x6a   :  { %351 = vmatpush.msra.mxu0 %v1250_v34 }
  0x6b   :  { %371 = vmatpush.msra.mxu1 %v1252_v35 }
  0x6c   :  { %352 = vmatpush.msra.mxu0 %v1262_v38 }
  0x6d   :  { %372 = vmatpush.msra.mxu1 %v1264_v39 }
  0x6e   :  { %353 = vmatpush.msra.mxu0 %v1274_v42 }
  0x6f   :  { %373 = vmatpush.msra.mxu1 %v1276_v43 }
  0x70   :  { %354 = vmatpush.msra.mxu0 %v1286_v46 }
  0x71   :  { %374 = vmatpush.msra.mxu1 %v1288_v47  ;;  %v1852_v47 = vmov 0.0  }
  0x72   :  { %355 = vmatpush.msra.mxu0 %v1298_v50 }
  0x73   :  { %375 = vmatpush.msra.mxu1 %v1300_v51  ;;  %v1408_v51 = vld [vmem:[#allocation8 + $0x80] sm:$0xff] }
  0x74   :  { %424 = vmatpush.msrb.mxu0 %v1154_v0  ;;  %248 = vmatpush.msra.mxu3 %v1408_v51 }
  0x75   :  { %249 = vmatmul.f32.vlgmr.msra.gmra.mxu3 %v1852_v47  ;;  %v1447_v47 = vld [vmem:[%s1798_s2] ss:$0 sm:$0xff] }
  0x76   :  { %317 = vmatpush.msrb.mxu3 %v1198_v16  ;;  %425 = vmatpush.msrb.mxu0 %v1156_v1 }
  0x78   :  { %318 = vmatpush.msrb.mxu3 %v1206_v19  ;;  %426 = vmatpush.msrb.mxu0 %v1164_v4 }
  0x7a   :  { %319 = vmatpush.msrb.mxu3 %v1212_v21  ;;  %427 = vmatpush.msrb.mxu0 %v1170_v6 }
  0x7c   :  { %320 = vmatpush.msrb.mxu3 %v1228_v27  ;;  %428 = vmatpush.msrb.mxu0 %v1176_v8 }
  0x7e   :  { %321 = vmatpush.msrb.mxu3 %v1236_v29  ;;  %429 = vmatpush.msrb.mxu0 %v1182_v10 }
  0x80   :  { %322 = vmatpush.msrb.mxu3 %v1248_v33  ;;  %430 = vmatpush.msrb.mxu0 %v1188_v12 }
  0x82   :  { %323 = vmatpush.msrb.mxu3 %v1260_v37  ;;  %431 = vmatpush.msrb.mxu0 %v1200_v17 }
  0x84   :  { %324 = vmatpush.msrb.mxu3 %v1272_v41  ;;  %432 = vmatpush.msrb.mxu0 %v1214_v22 }
  0x86   :  { %325 = vmatpush.msrb.mxu3 %v1284_v45  ;;  %433 = vmatpush.msrb.mxu0 %v1216_v23 }
  0x88   :  { %326 = vmatpush.msrb.mxu3 %v1296_v49  ;;  %434 = vmatpush.msrb.mxu0 %v1238_v30 }
  0x8a   :  { %327 = vmatpush.msrb.mxu3 %v1312_v54  ;;  %435 = vmatpush.msrb.mxu0 %v1250_v34 }
  0x8c   :  { %328 = vmatpush.msrb.mxu3 %v1386_v58  ;;  %436 = vmatpush.msrb.mxu0 %v1262_v38 }
  0x8e   :  { %329 = vmatpush.msrb.mxu3 %v1392_v60  ;;  %437 = vmatpush.msrb.mxu0 %v1274_v42 }
  0x90   :  { %330 = vmatpush.msrb.mxu3 %v1398_v62  ;;  %438 = vmatpush.msrb.mxu0 %v1286_v46 }
  0x92   :  { %331 = vmatpush.msrb.mxu3 %v1404_v55  ;;  %439 = vmatpush.msrb.mxu0 %v1298_v50 }
  0x94   :  { %332 = vmatpush.msrb.mxu3 %v1408_v51 }
  0x96   :  { %401 = vmatpush.msra.mxu3 %v1198_v16 }
  0x98   :  { %402 = vmatpush.msra.mxu3 %v1206_v19 }
  0x9a   :  { %403 = vmatpush.msra.mxu3 %v1212_v21 }
  0x9c   :  { %404 = vmatpush.msra.mxu3 %v1228_v27 }
  0x9e   :  { %405 = vmatpush.msra.mxu3 %v1236_v29 }
  0xa0   :  { %406 = vmatpush.msra.mxu3 %v1248_v33 }
  0xa2   :  { %407 = vmatpush.msra.mxu3 %v1260_v37 }
  0xa4   :  { %408 = vmatpush.msra.mxu3 %v1272_v41 }
  0xa6   :  { %409 = vmatpush.msra.mxu3 %v1284_v45 }
  0xa8   :  { %410 = vmatpush.msra.mxu3 %v1296_v49 }
  0xaa   :  { %411 = vmatpush.msra.mxu3 %v1312_v54 }
  0xac   :  { %412 = vmatpush.msra.mxu3 %v1386_v58 }
  0xae   :  { %413 = vmatpush.msra.mxu3 %v1392_v60 }
  0xb0   :  { %v157_v63 = vpop.f32.mrf.mxu0  ;;  %414 = vmatpush.msra.mxu3 %v1398_v62 }
  0xb1   :  { %v177_v23 = vpop.f32.mrf.mxu1  ;;  %v158_v30 = vadd.f32 %v1447_v47, %v157_v63  ;;  %v1856_v63 = vld [vmem:[#allocation23_spill] sm:$0xff] }
  0xb2   :  { %415 = vmatpush.msra.mxu3 %v1404_v55 }
  0xb3   :  { %v178_v22 = vadd.f32 %v177_v23, %v158_v30  ;;  %v1854_v23 = vld [vmem:[#allocation28_spill] sm:$0xff]  ;;  %v339_v30 = vld [vmem:[#allocation3 + $0x10] sm:$0xff] }
  0xb4   :  { %416 = vmatpush.msra.mxu3 %v1408_v51  ;;  %356 = vmatmul.f32.vlgmr.msra.gmra.mxu0 %v339_v30  ;;  %v1857_v30 = vld [vmem:[#allocation24_spill] sm:$0xff] }
  0xb5   :  { %v180_v34 = vmax.f32 %v178_v22, 0.0  ;;  %v1853_v22 = vld [vmem:[#allocation27_spill] sm:$0xff]  ;;  %508 = vmatpush.msra.mxu0 %v1154_v0 }
  0xb7   :  { %229 = vmatmul.f32.vlgmr.msra.gmra.mxu2 %v180_v34  ;;  %292 = vmatmul.f32.vlgmr.msrb.gmra.mxu1 %v180_v34  ;;  %v1855_v34 = vld [vmem:[#allocation22_spill] sm:$0xff] }
  0xb8   :  { %381 = vmatpush.msra.mxu2 %v1194_v14  ;;  %444 = vmatpush.msrb.mxu1 %v1158_v2 }
  0xb9   :  { %509 = vmatpush.msra.mxu0 %v1156_v1  ;;  %v1858_v1 = vld [vmem:[#allocation25_spill] sm:$0xff] }
  0xba   :  { %382 = vmatpush.msra.mxu2 %v1196_v15  ;;  %445 = vmatpush.msrb.mxu1 %v1162_v3 }
  0xbb   :  { %510 = vmatpush.msra.mxu0 %v1164_v4 }
  0xbc   :  { %383 = vmatpush.msra.mxu2 %v1210_v20  ;;  %446 = vmatpush.msrb.mxu1 %v1166_v5 }
  0xbd   :  { %511 = vmatpush.msra.mxu0 %v1170_v6 }
  0xbe   :  { %384 = vmatpush.msra.mxu2 %v1226_v26  ;;  %447 = vmatpush.msrb.mxu1 %v1172_v7 }
  0xbf   :  { %512 = vmatpush.msra.mxu0 %v1176_v8 }
  0xc0   :  { %385 = vmatpush.msra.mxu2 %v1234_v28  ;;  %448 = vmatpush.msrb.mxu1 %v1178_v9 }
  0xc1   :  { %513 = vmatpush.msra.mxu0 %v1182_v10 }
  0xc2   :  { %386 = vmatpush.msra.mxu2 %v1246_v32  ;;  %449 = vmatpush.msrb.mxu1 %v1184_v11 }
  0xc3   :  { %514 = vmatpush.msra.mxu0 %v1188_v12 }
  0xc4   :  { %387 = vmatpush.msra.mxu2 %v1258_v36  ;;  %450 = vmatpush.msrb.mxu1 %v1190_v13 }
  0xc5   :  { %515 = vmatpush.msra.mxu0 %v1200_v17 }
  0xc6   :  { %388 = vmatpush.msra.mxu2 %v1270_v40  ;;  %451 = vmatpush.msrb.mxu1 %v1202_v18 }
  0xc7   :  { %516 = vmatpush.msra.mxu0 %v1855_v34 }
  0xc8   :  { %389 = vmatpush.msra.mxu2 %v1282_v44  ;;  %452 = vmatpush.msrb.mxu1 %v1218_v24 }
  0xc9   :  { %517 = vmatpush.msra.mxu0 %v1856_v63 }
  0xca   :  { %390 = vmatpush.msra.mxu2 %v1294_v48  ;;  %453 = vmatpush.msrb.mxu1 %v1224_v25 }
  0xcb   :  { %518 = vmatpush.msra.mxu0 %v1857_v30  ;;  %v1534_v30 = vld [vmem:[%s1800_s4] ss:$0 sm:$0xff] }
  0xcc   :  { %391 = vmatpush.msra.mxu2 %v1310_v53  ;;  %454 = vmatpush.msrb.mxu1 %v1240_v31 }
  0xcd   :  { %519 = vmatpush.msra.mxu0 %v1858_v1 }
  0xce   :  { %392 = vmatpush.msra.mxu2 %v1317_v56  ;;  %455 = vmatpush.msrb.mxu1 %v1252_v35 }
  0xcf   :  { %520 = vmatpush.msra.mxu0 %v1262_v38 }
  0xd0   :  { %393 = vmatpush.msra.mxu2 %v1384_v57  ;;  %456 = vmatpush.msrb.mxu1 %v1264_v39  ;;  %v273_v0 = vpop.f32.mrf.mxu0 }
  0xd1   :  { %v274_v6 = vadd.f32 %v1447_v47, %v273_v0  ;;  %521 = vmatpush.msra.mxu0 %v1274_v42 }
  0xd2   :  { %394 = vmatpush.msra.mxu2 %v1390_v59  ;;  %457 = vmatpush.msrb.mxu1 %v1276_v43 }
  0xd3   :  { %522 = vmatpush.msra.mxu0 %v1286_v46 }
  0xd4   :  { %395 = vmatpush.msra.mxu2 %v1396_v61  ;;  %458 = vmatpush.msrb.mxu1 %v1853_v22 }
  0xd5   :  { %523 = vmatpush.msra.mxu0 %v1298_v50 }
  0xd6   :  { %396 = vmatpush.msra.mxu2 %v1402_v52  ;;  %459 = vmatpush.msrb.mxu1 %v1854_v23 }
  0xf8   :  { %v250_v38 = vpop.f32.mrf.mxu3 }
 0x134   :  { %v293_v10 = vpop.f32.mrf.mxu1 }
 0x135   :  { %v294_v12 = vadd.f32 %v293_v10, %v274_v6 }
 0x137   :  { %v296_v34 = vmax.f32 %v294_v12, 0.0  ;;  %v1859_v12 = vld [vmem:[#allocation16_spill] sm:$0xff] }
 0x139   :  { %313 = vmatmul.f32.vlgmr.msrb.gmra.mxu2 %v296_v34  ;;  %376 = vmatmul.f32.vlgmr.msra.gmra.mxu1 %v296_v34  ;;  %v1861_v34 = vld [vmem:[#allocation19_spill] sm:$0xff] }
 0x13a   :  { %v230_v1 = vpop.f32.mrf.mxu2  ;;  %465 = vmatpush.msrb.mxu2 %v1194_v14  ;;  %528 = vmatpush.msra.mxu1 %v1158_v2 }
 0x13b   :  { %v231_v0 = vadd.f32 %v1534_v30, %v230_v1  ;;  %v423_v1 = vld [vmem:[#allocation3 + $0x18] sm:$0xff] }
 0x13c   :  { %466 = vmatpush.msrb.mxu2 %v1196_v15  ;;  %529 = vmatpush.msra.mxu1 %v1162_v3 }
 0x13d   :  { %v251_v6 = vadd.f32 %v250_v38, %v231_v0  ;;  %440 = vmatmul.f32.vlgmr.msrb.gmra.mxu0 %v423_v1  ;;  %v1860_v38 = vld [vmem:[#allocation17_spill] sm:$0xff]  ;;  %v1862_v0 = vld [vmem:[#allocation20_spill] sm:$0xff] }
 0x13e   :  { %467 = vmatpush.msrb.mxu2 %v1210_v20  ;;  %530 = vmatpush.msra.mxu1 %v1166_v5  ;;  %v1865_v1 = vld [vmem:[#allocation24_spill] sm:$0xff] }
 0x13f   :  { %v253_v10 = vmax.f32 %v251_v6, 0.0  ;;  %592 = vmatpush.msrb.mxu0 %v1859_v12  ;;  %v1863_v6 = vld [vmem:[#allocation21_spill] sm:$0xff]  ;;  %v357_v12 = vpop.f32.mrf.mxu0 }
 0x140   :  { %468 = vmatpush.msrb.mxu2 %v1226_v26  ;;  %531 = vmatpush.msra.mxu1 %v1172_v7 }
 0x141   :  { %333 = vmatmul.f32.vlgmr.msrb.gmra.mxu3 %v253_v10  ;;  %593 = vmatpush.msrb.mxu0 %v1860_v38  ;;  %v1864_v10 = vld [vmem:[#allocation22_spill] sm:$0xff]  ;;  %v1866_v38 = vld [vmem:[#allocation25_spill] sm:$0xff] }
 0x142   :  { %469 = vmatpush.msrb.mxu2 %v1234_v28  ;;  %532 = vmatpush.msra.mxu1 %v1178_v9 }
 0x143   :  { %485 = vmatpush.msrb.mxu3 %v1198_v16  ;;  %594 = vmatpush.msrb.mxu0 %v1164_v4  ;;  %v1867_v4 = vld [vmem:[#allocation26_spill] sm:$0xff] }
 0x144   :  { %470 = vmatpush.msrb.mxu2 %v1246_v32  ;;  %533 = vmatpush.msra.mxu1 %v1184_v11 }
 0x145   :  { %486 = vmatpush.msrb.mxu3 %v1206_v19  ;;  %595 = vmatpush.msrb.mxu0 %v1861_v34  ;;  %v358_v34 = vadd.f32 %v1447_v47, %v357_v12 }
 0x146   :  { %471 = vmatpush.msrb.mxu2 %v1258_v36  ;;  %534 = vmatpush.msra.mxu1 %v1190_v13 }
 0x147   :  { %487 = vmatpush.msrb.mxu3 %v1212_v21  ;;  %596 = vmatpush.msrb.mxu0 %v1176_v8 }
 0x148   :  { %472 = vmatpush.msrb.mxu2 %v1270_v40  ;;  %535 = vmatpush.msra.mxu1 %v1202_v18 }
 0x149   :  { %488 = vmatpush.msrb.mxu3 %v1228_v27  ;;  %597 = vmatpush.msrb.mxu0 %v1862_v0 }
 0x14a   :  { %473 = vmatpush.msrb.mxu2 %v1282_v44  ;;  %536 = vmatpush.msra.mxu1 %v1218_v24 }
 0x14b   :  { %489 = vmatpush.msrb.mxu3 %v1236_v29  ;;  %598 = vmatpush.msrb.mxu0 %v1863_v6 }
 0x14c   :  { %474 = vmatpush.msrb.mxu2 %v1294_v48  ;;  %537 = vmatpush.msra.mxu1 %v1224_v25 }
 0x14d   :  { %490 = vmatpush.msrb.mxu3 %v1248_v33  ;;  %599 = vmatpush.msrb.mxu0 %v1200_v17 }
 0x14e   :  { %475 = vmatpush.msrb.mxu2 %v1310_v53  ;;  %538 = vmatpush.msra.mxu1 %v1240_v31 }
 0x14f   :  { %491 = vmatpush.msrb.mxu3 %v1260_v37  ;;  %600 = vmatpush.msrb.mxu0 %v1864_v10 }
 0x150   :  { %476 = vmatpush.msrb.mxu2 %v1317_v56  ;;  %539 = vmatpush.msra.mxu1 %v1252_v35 }
 0x151   :  { %492 = vmatpush.msrb.mxu3 %v1272_v41  ;;  %601 = vmatpush.msrb.mxu0 %v1856_v63 }
 0x152   :  { %477 = vmatpush.msrb.mxu2 %v1384_v57  ;;  %540 = vmatpush.msra.mxu1 %v1264_v39 }
 0x153   :  { %493 = vmatpush.msrb.mxu3 %v1284_v45  ;;  %602 = vmatpush.msrb.mxu0 %v1865_v1 }
 0x154   :  { %478 = vmatpush.msrb.mxu2 %v1390_v59  ;;  %541 = vmatpush.msra.mxu1 %v1276_v43 }
 0x155   :  { %494 = vmatpush.msrb.mxu3 %v1296_v49  ;;  %603 = vmatpush.msrb.mxu0 %v1866_v38 }
 0x156   :  { %479 = vmatpush.msrb.mxu2 %v1396_v61  ;;  %542 = vmatpush.msra.mxu1 %v1853_v22 }
 0x157   :  { %495 = vmatpush.msrb.mxu3 %v1312_v54  ;;  %604 = vmatpush.msrb.mxu0 %v1867_v4 }
 0x158   :  { %480 = vmatpush.msrb.mxu2 %v1402_v52  ;;  %543 = vmatpush.msra.mxu1 %v1854_v23 }
 0x159   :  { %496 = vmatpush.msrb.mxu3 %v1386_v58  ;;  %605 = vmatpush.msrb.mxu0 %v1274_v42 }
 0x15b   :  { %497 = vmatpush.msrb.mxu3 %v1392_v60  ;;  %606 = vmatpush.msrb.mxu0 %v1286_v46 }
 0x15d   :  { %498 = vmatpush.msrb.mxu3 %v1398_v62  ;;  %607 = vmatpush.msrb.mxu0 %v1298_v50 }
 0x15f   :  { %499 = vmatpush.msrb.mxu3 %v1404_v55 }
 0x161   :  { %500 = vmatpush.msrb.mxu3 %v1408_v51 }
 0x1b6   :  { %v377_v0 = vpop.f32.mrf.mxu1 }
 0x1b7   :  { %v378_v6 = vadd.f32 %v377_v0, %v358_v34 }
 0x1b9   :  { %v380_v10 = vmax.f32 %v378_v6, 0.0 }
 0x1bb   :  { %397 = vmatmul.f32.vlgmr.msra.gmra.mxu2 %v380_v10  ;;  %460 = vmatmul.f32.vlgmr.msrb.gmra.mxu1 %v380_v10 }
 0x1bc   :  { %549 = vmatpush.msra.mxu2 %v1194_v14  ;;  %612 = vmatpush.msrb.mxu1 %v1158_v2  ;;  %v314_v12 = vpop.f32.mrf.mxu2 }
 0x1bd   :  { %v315_v34 = vadd.f32 %v1534_v30, %v314_v12  ;;  %v507_v12 = vld [vmem:[#allocation3 + $0x20] sm:$0xff] }
 0x1be   :  { %550 = vmatpush.msra.mxu2 %v1196_v15  ;;  %613 = vmatpush.msrb.mxu1 %v1162_v3 }
 0x1bf   :  { %524 = vmatmul.f32.vlgmr.msra.gmra.mxu0 %v507_v12  ;;  %v441_v12 = vpop.f32.mrf.mxu0 }
 0x1c0   :  { %551 = vmatpush.msra.mxu2 %v1210_v20  ;;  %614 = vmatpush.msrb.mxu1 %v1166_v5 }
 0x1c2   :  { %552 = vmatpush.msra.mxu2 %v1226_v26  ;;  %615 = vmatpush.msrb.mxu1 %v1172_v7 }
 0x1c4   :  { %v334_v0 = vpop.f32.mrf.mxu3  ;;  %553 = vmatpush.msra.mxu2 %v1234_v28  ;;  %616 = vmatpush.msrb.mxu1 %v1178_v9 }
 0x1c5   :  { %v335_v6 = vadd.f32 %v334_v0, %v315_v34  ;;  %v1868_v34 = vld [vmem:[#allocation16_spill] sm:$0xff]  ;;  %v1869_v0 = vld [vmem:[#allocation17_spill] sm:$0xff] }
 0x1c6   :  { %554 = vmatpush.msra.mxu2 %v1246_v32  ;;  %617 = vmatpush.msrb.mxu1 %v1184_v11 }
 0x1c7   :  { %v337_v10 = vmax.f32 %v335_v6, 0.0  ;;  %676 = vmatpush.msra.mxu0 %v1868_v34  ;;  %v1870_v6 = vld [vmem:[#allocation18_spill] sm:$0xff]  ;;  %v442_v34 = vadd.f32 %v1447_v47, %v441_v12 }
 0x1c8   :  { %555 = vmatpush.msra.mxu2 %v1258_v36  ;;  %618 = vmatpush.msrb.mxu1 %v1190_v13 }
 0x1c9   :  { %417 = vmatmul.f32.vlgmr.msra.gmra.mxu3 %v337_v10  ;;  %677 = vmatpush.msra.mxu0 %v1869_v0  ;;  %v1871_v10 = vld [vmem:[#allocation19_spill] sm:$0xff]  ;;  %v943_v0 = vld [vmem:[#allocation6 + $0xb0] sm:$0xff] }
 0x1ca   :  { %556 = vmatpush.msra.mxu2 %v1270_v40  ;;  %619 = vmatpush.msrb.mxu1 %v1202_v18 }
 0x1cb   :  { %569 = vmatpush.msra.mxu3 %v1198_v16  ;;  %678 = vmatpush.msra.mxu0 %v1870_v6 }
 0x1cc   :  { %557 = vmatpush.msra.mxu2 %v1282_v44  ;;  %620 = vmatpush.msrb.mxu1 %v1218_v24 }
 0x1cd   :  { %570 = vmatpush.msra.mxu3 %v1206_v19  ;;  %679 = vmatpush.msra.mxu0 %v1871_v10 }
 0x1ce   :  { %558 = vmatpush.msra.mxu2 %v1294_v48  ;;  %621 = vmatpush.msrb.mxu1 %v1224_v25 }
 0x1cf   :  { %571 = vmatpush.msra.mxu3 %v1212_v21  ;;  %680 = vmatpush.msra.mxu0 %v1176_v8 }
 0x1d0   :  { %559 = vmatpush.msra.mxu2 %v1310_v53  ;;  %622 = vmatpush.msrb.mxu1 %v1240_v31 }
 0x1d1   :  { %572 = vmatpush.msra.mxu3 %v1228_v27 }
 0x1d2   :  { %560 = vmatpush.msra.mxu2 %v1317_v56  ;;  %623 = vmatpush.msrb.mxu1 %v1252_v35 }
 0x1d3   :  { %573 = vmatpush.msra.mxu3 %v1236_v29 }
 0x1d4   :  { %561 = vmatpush.msra.mxu2 %v1384_v57  ;;  %624 = vmatpush.msrb.mxu1 %v1264_v39 }
 0x1d5   :  { %574 = vmatpush.msra.mxu3 %v1248_v33 }
 0x1d6   :  { %562 = vmatpush.msra.mxu2 %v1390_v59  ;;  %625 = vmatpush.msrb.mxu1 %v1276_v43 }
 0x1d7   :  { %575 = vmatpush.msra.mxu3 %v1260_v37 }
 0x1d8   :  { %563 = vmatpush.msra.mxu2 %v1396_v61  ;;  %626 = vmatpush.msrb.mxu1 %v1853_v22 }
 0x1d9   :  { %576 = vmatpush.msra.mxu3 %v1272_v41 }
 0x1da   :  { %564 = vmatpush.msra.mxu2 %v1402_v52  ;;  %627 = vmatpush.msrb.mxu1 %v1854_v23 }
 0x1db   :  { %577 = vmatpush.msra.mxu3 %v1284_v45 }
 0x1dd   :  { %578 = vmatpush.msra.mxu3 %v1296_v49 }
 0x1df   :  { %579 = vmatpush.msra.mxu3 %v1312_v54 }
 0x1e1   :  { %580 = vmatpush.msra.mxu3 %v1386_v58  ;;  %v1872_v58 = vld [vmem:[#allocation20_spill] sm:$0xff] }
 0x1e2   :  { %681 = vmatpush.msra.mxu0 %v1872_v58 }
 0x1e3   :  { %581 = vmatpush.msra.mxu3 %v1392_v60  ;;  %v1873_v60 = vld [vmem:[#allocation21_spill] sm:$0xff] }
 0x1e4   :  { %682 = vmatpush.msra.mxu0 %v1873_v60  ;;  %v939_v60 = vld [vmem:[#allocation6 + $0xd0] sm:$0xff] }
 0x1e5   :  { %582 = vmatpush.msra.mxu3 %v1398_v62 }
 0x1e6   :  { %683 = vmatpush.msra.mxu0 %v1200_v17 }
 0x1e7   :  { %583 = vmatpush.msra.mxu3 %v1404_v55  ;;  %v1874_v55 = vld [vmem:[#allocation22_spill] sm:$0xff] }
 0x1e8   :  { %684 = vmatpush.msra.mxu0 %v1874_v55 }
 0x1e9   :  { %584 = vmatpush.msra.mxu3 %v1408_v51 }
 0x1ea   :  { %685 = vmatpush.msra.mxu0 %v1856_v63  ;;  %v941_v63 = vld [vmem:[#allocation6 + $0xc0] sm:$0xff] }
 0x1ec   :  { %686 = vmatpush.msra.mxu0 %v1865_v1 }
 0x1ee   :  { %687 = vmatpush.msra.mxu0 %v1866_v38 }
 0x1f0   :  { %688 = vmatpush.msra.mxu0 %v1867_v4 }
 0x1f2   :  { %689 = vmatpush.msra.mxu0 %v1274_v42 }
 0x1f4   :  { %690 = vmatpush.msra.mxu0 %v1286_v46 }
 0x1f6   :  { %691 = vmatpush.msra.mxu0 %v1298_v50 }
 0x238   :  { %v461_v8 = vpop.f32.mrf.mxu1 }
 0x239   :  { %v462_v58 = vadd.f32 %v461_v8, %v442_v34  ;;  %v1751_v8 = vld [vmem:[#allocation8 + $0xf8] sm:$0xff] }
 0x23b   :  { %v464_v17 = vmax.f32 %v462_v58, 0.0  ;;  %v951_v58 = vld [vmem:[#allocation8 + $0xe8] sm:$0xff] }
 0x23d   :  { %481 = vmatmul.f32.vlgmr.msrb.gmra.mxu2 %v464_v17  ;;  %544 = vmatmul.f32.vlgmr.msra.gmra.mxu1 %v464_v17  ;;  %v952_v17 = vld [vmem:[#allocation8 + $0xe0] sm:$0xff] }
 0x23e   :  { %633 = vmatpush.msrb.mxu2 %v1194_v14  ;;  %696 = vmatpush.msra.mxu1 %v1158_v2  ;;  %v398_v55 = vpop.f32.mrf.mxu2  ;;  %v591_v14 = vld [vmem:[#allocation3 + $0x28] sm:$0xff] }
 0x23f   :  { %v399_v2 = vadd.f32 %v1534_v30, %v398_v55  ;;  %608 = vmatmul.f32.vlgmr.msrb.gmra.mxu0 %v591_v14  ;;  %v953_v55 = vld [vmem:[#allocation8 + $0xd8] sm:$0xff]  ;;  %v958_v14 = vld [vmem:[#allocation8 + $0xb0] sm:$0xff] }
 0x240   :  { %634 = vmatpush.msrb.mxu2 %v1196_v15  ;;  %697 = vmatpush.msra.mxu1 %v1162_v3  ;;  %v918_v15 = vld [vmem:[#allocation6 + $0x78] sm:$0xff] }
 0x241   :  { %760 = vmatpush.msrb.mxu0 %v918_v15 }
 0x242   :  { %635 = vmatpush.msrb.mxu2 %v1210_v20  ;;  %698 = vmatpush.msra.mxu1 %v1166_v5  ;;  %v922_v20 = vld [vmem:[#allocation6 + $0x58] sm:$0xff] }
 0x244   :  { %636 = vmatpush.msrb.mxu2 %v1226_v26  ;;  %699 = vmatpush.msra.mxu1 %v1172_v7  ;;  %v926_v26 = vld [vmem:[#allocation6 + $0x38] sm:$0xff] }
 0x246   :  { %637 = vmatpush.msrb.mxu2 %v1234_v28  ;;  %700 = vmatpush.msra.mxu1 %v1178_v9  ;;  %v1875_v9 = vld [vmem:[#allocation29_spill] sm:$0xff]  ;;  %v525_v28 = vpop.f32.mrf.mxu0 }
 0x248   :  { %638 = vmatpush.msrb.mxu2 %v1246_v32  ;;  %701 = vmatpush.msra.mxu1 %v1184_v11  ;;  %v1876_v11 = vld [vmem:[#allocation30_spill] sm:$0xff] }
 0x24a   :  { %639 = vmatpush.msrb.mxu2 %v1258_v36  ;;  %702 = vmatpush.msra.mxu1 %v1190_v13  ;;  %v1877_v13 = vld [vmem:[#allocation31_spill] sm:$0xff] }
 0x24c   :  { %v418_v3 = vpop.f32.mrf.mxu3  ;;  %640 = vmatpush.msrb.mxu2 %v1270_v40  ;;  %703 = vmatpush.msra.mxu1 %v1202_v18  ;;  %v920_v18 = vld [vmem:[#allocation6 + $0x68] sm:$0xff] }
 0x24d   :  { %v419_v5 = vadd.f32 %v418_v3, %v399_v2  ;;  %v954_v2 = vld [vmem:[#allocation8 + $0xd0] sm:$0xff]  ;;  %v955_v3 = vld [vmem:[#allocation8 + $0xc8] sm:$0xff] }
 0x24e   :  { %641 = vmatpush.msrb.mxu2 %v1282_v44  ;;  %704 = vmatpush.msra.mxu1 %v1218_v24  ;;  %v924_v24 = vld [vmem:[#allocation6 + $0x48] sm:$0xff] }
 0x24f   :  { %v421_v7 = vmax.f32 %v419_v5, 0.0  ;;  %v956_v5 = vld [vmem:[#allocation8 + $0xc0] sm:$0xff] }
 0x250   :  { %642 = vmatpush.msrb.mxu2 %v1294_v48  ;;  %705 = vmatpush.msra.mxu1 %v1224_v25  ;;  %v925_v25 = vld [vmem:[#allocation6 + $0x40] sm:$0xff] }
 0x251   :  { %501 = vmatmul.f32.vlgmr.msrb.gmra.mxu3 %v421_v7  ;;  %v957_v7 = vld [vmem:[#allocation8 + $0xb8] sm:$0xff] }
 0x252   :  { %643 = vmatpush.msrb.mxu2 %v1310_v53  ;;  %706 = vmatpush.msra.mxu1 %v1240_v31 }
 0x253   :  { %653 = vmatpush.msrb.mxu3 %v1198_v16  ;;  %v919_v16 = vld [vmem:[#allocation6 + $0x70] sm:$0xff] }
 0x254   :  { %644 = vmatpush.msrb.mxu2 %v1317_v56  ;;  %707 = vmatpush.msra.mxu1 %v1252_v35  ;;  %v1724_v35 = vld [vmem:[#allocation8 + $0x78] sm:$0xff] }
 0x255   :  { %654 = vmatpush.msrb.mxu3 %v1206_v19  ;;  %761 = vmatpush.msrb.mxu0 %v919_v16  ;;  %v921_v19 = vld [vmem:[#allocation6 + $0x60] sm:$0xff] }
 0x256   :  { %645 = vmatpush.msrb.mxu2 %v1384_v57  ;;  %708 = vmatpush.msra.mxu1 %v1264_v39  ;;  %v931_v39 = vld [vmem:[#allocation6 + $0xf0] sm:$0xff] }
 0x257   :  { %655 = vmatpush.msrb.mxu3 %v1212_v21  ;;  %762 = vmatpush.msrb.mxu0 %v920_v18  ;;  %v923_v21 = vld [vmem:[#allocation6 + $0x50] sm:$0xff] }
 0x258   :  { %646 = vmatpush.msrb.mxu2 %v1390_v59  ;;  %709 = vmatpush.msra.mxu1 %v1276_v43  ;;  %v1733_v43 = vld [vmem:[#allocation8 + $0x60] sm:$0xff] }
 0x259   :  { %656 = vmatpush.msrb.mxu3 %v1228_v27  ;;  %763 = vmatpush.msrb.mxu0 %v921_v19  ;;  %v927_v27 = vld [vmem:[#allocation6 + $0x30] sm:$0xff] }
 0x25a   :  { %647 = vmatpush.msrb.mxu2 %v1396_v61  ;;  %710 = vmatpush.msra.mxu1 %v1853_v22  ;;  %v940_v22 = vld [vmem:[#allocation6 + $0xc8] sm:$0xff] }
 0x25b   :  { %657 = vmatpush.msrb.mxu3 %v1236_v29  ;;  %764 = vmatpush.msrb.mxu0 %v922_v20  ;;  %v526_v29 = vadd.f32 %v1447_v47, %v525_v28  ;;  %v964_v28 = vld [vmem:[#allocation8 + $0x20] sm:$0xff] }
 0x25c   :  { %648 = vmatpush.msrb.mxu2 %v1402_v52  ;;  %711 = vmatpush.msra.mxu1 %v1854_v23 }
 0x25d   :  { %658 = vmatpush.msrb.mxu3 %v1248_v33  ;;  %765 = vmatpush.msrb.mxu0 %v923_v21  ;;  %v960_v21 = vld [vmem:[#allocation8 + $0x40] sm:$0xff] }
 0x25f   :  { %659 = vmatpush.msrb.mxu3 %v1260_v37  ;;  %766 = vmatpush.msrb.mxu0 %v924_v24  ;;  %v929_v37 = vld [vmem:[#allocation6 + $0xf8] sm:$0xff] }
 0x260   :  { %v961_v24 = vld [vmem:[#allocation8 + $0x38] sm:$0xff] }
 0x261   :  { %660 = vmatpush.msrb.mxu3 %v1272_v41  ;;  %767 = vmatpush.msrb.mxu0 %v925_v25  ;;  %v1730_v41 = vld [vmem:[#allocation8 + $0x68] sm:$0xff]  ;;  %v962_v25 = vld [vmem:[#allocation8 + $0x30] sm:$0xff] }
 0x263   :  { %661 = vmatpush.msrb.mxu3 %v1284_v45  ;;  %768 = vmatpush.msrb.mxu0 %v926_v26  ;;  %v935_v45 = vld [vmem:[#allocation6 + $0xe0] sm:$0xff]  ;;  %v963_v26 = vld [vmem:[#allocation8 + $0x28] sm:$0xff] }
 0x265   :  { %662 = vmatpush.msrb.mxu3 %v1296_v49  ;;  %769 = vmatpush.msrb.mxu0 %v927_v27  ;;  %v937_v49 = vld [vmem:[#allocation6 + $0xd8] sm:$0xff] }
 0x267   :  { %663 = vmatpush.msrb.mxu3 %v1312_v54  ;;  %770 = vmatpush.msrb.mxu0 %v1865_v1  ;;  %v942_v1 = vld [vmem:[#allocation6 + $0xb8] sm:$0xff] }
 0x269   :  { %664 = vmatpush.msrb.mxu3 %v1875_v9  ;;  %771 = vmatpush.msrb.mxu0 %v1866_v38 }
 0x26b   :  { %665 = vmatpush.msrb.mxu3 %v1876_v11  ;;  %772 = vmatpush.msrb.mxu0 %v1867_v4  ;;  %v1727_v4 = vld [vmem:[#allocation8 + $0x70] sm:$0xff] }
 0x26d   :  { %666 = vmatpush.msrb.mxu3 %v1398_v62  ;;  %773 = vmatpush.msrb.mxu0 %v1274_v42  ;;  %v933_v42 = vld [vmem:[#allocation6 + $0xe8] sm:$0xff] }
 0x26f   :  { %667 = vmatpush.msrb.mxu3 %v1877_v13  ;;  %774 = vmatpush.msrb.mxu0 %v1286_v46  ;;  %v1736_v46 = vld [vmem:[#allocation8 + $0x58] sm:$0xff] }
 0x271   :  { %668 = vmatpush.msrb.mxu3 %v1408_v51  ;;  %775 = vmatpush.msrb.mxu0 %v1298_v50  ;;  %v1739_v50 = vld [vmem:[#allocation8 + $0x50] sm:$0xff] }
 0x2ba   :  { %v545_v31 = vpop.f32.mrf.mxu1 }
 0x2bb   :  { %v546_v32 = vadd.f32 %v545_v31, %v526_v29 }
 0x2bc   :  { %v609_v15 = vpop.f32.mrf.mxu0 }
 0x2bd   :  { %v548_v33 = vmax.f32 %v546_v32, 0.0  ;;  %v610_v16 = vadd.f32 %v1447_v47, %v609_v15 }
 0x2bf   :  { %565 = vmatmul.f32.vlgmr.msra.gmra.mxu2 %v548_v33  ;;  %628 = vmatmul.f32.vlgmr.msrb.gmra.mxu1 %v548_v33 }
 0x2c0   :  { %717 = vmatpush.msra.mxu2 %v1724_v35  ;;  %780 = vmatpush.msrb.mxu1 %v929_v37  ;;  %v482_v38 = vpop.f32.mrf.mxu2 }
 0x2c1   :  { %v483_v6 = vadd.f32 %v1534_v30, %v482_v38  ;;  %v861_v38 = vld [vmem:[#allocation9 + $0x70] sm:$0xff] }
 0x2c2   :  { %718 = vmatpush.msra.mxu2 %v1727_v4  ;;  %781 = vmatpush.msrb.mxu1 %v931_v39 }
 0x2c4   :  { %719 = vmatpush.msra.mxu2 %v1730_v41  ;;  %782 = vmatpush.msrb.mxu1 %v933_v42 }
 0x2c6   :  { %720 = vmatpush.msra.mxu2 %v1733_v43  ;;  %783 = vmatpush.msrb.mxu1 %v935_v45 }
 0x2c8   :  { %721 = vmatpush.msra.mxu2 %v1736_v46  ;;  %784 = vmatpush.msrb.mxu1 %v937_v49 }
 0x2ca   :  { %722 = vmatpush.msra.mxu2 %v1739_v50  ;;  %785 = vmatpush.msrb.mxu1 %v939_v60 }
 0x2cc   :  { %723 = vmatpush.msra.mxu2 %v1258_v36  ;;  %786 = vmatpush.msrb.mxu1 %v940_v22  ;;  %v944_v36 = vld [vmem:[#allocation6 + $0xa8] sm:$0xff] }
 0x2ce   :  { %724 = vmatpush.msra.mxu2 %v1270_v40  ;;  %787 = vmatpush.msrb.mxu1 %v941_v63  ;;  %v945_v40 = vld [vmem:[#allocation6 + $0xa0] sm:$0xff]  ;;  %v862_v63 = vld [vmem:[#allocation9 + $0x78] sm:$0xff] }
 0x2d0   :  { %725 = vmatpush.msra.mxu2 %v1282_v44  ;;  %788 = vmatpush.msrb.mxu1 %v942_v1  ;;  %v946_v44 = vld [vmem:[#allocation6 + $0x98] sm:$0xff]  ;;  %v860_v1 = vld [vmem:[#allocation9 + $0x68] sm:$0xff] }
 0x2d2   :  { %726 = vmatpush.msra.mxu2 %v1294_v48  ;;  %789 = vmatpush.msrb.mxu1 %v943_v0  ;;  %v947_v48 = vld [vmem:[#allocation6 + $0x90] sm:$0xff]  ;;  %v859_v0 = vld [vmem:[#allocation9 + $0x60] sm:$0xff] }
 0x2d4   :  { %v502_v10 = vpop.f32.mrf.mxu3  ;;  %727 = vmatpush.msra.mxu2 %v1310_v53  ;;  %790 = vmatpush.msrb.mxu1 %v944_v36  ;;  %v949_v53 = vld [vmem:[#allocation6 + $0x88] sm:$0xff]  ;;  %v855_v36 = vld [vmem:[#allocation9 + $0x40] sm:$0xff] }
 0x2d5   :  { %v503_v12 = vadd.f32 %v502_v10, %v483_v6  ;;  %v858_v6 = vld [vmem:[#allocation9 + $0x58] sm:$0xff]  ;;  %v856_v10 = vld [vmem:[#allocation9 + $0x48] sm:$0xff] }
 0x2d6   :  { %728 = vmatpush.msra.mxu2 %v1317_v56  ;;  %791 = vmatpush.msrb.mxu1 %v945_v40  ;;  %v1755_v56 = vld [vmem:[#allocation8 + $0xf0] sm:$0xff] }
 0x2d7   :  { %v505_v34 = vmax.f32 %v503_v12, 0.0  ;;  %v854_v12 = vld [vmem:[#allocation9 + $0x38] sm:$0xff]  ;;  %v853_v40 = vld [vmem:[#allocation9 + $0x30] sm:$0xff] }
 0x2d8   :  { %729 = vmatpush.msra.mxu2 %v1384_v57  ;;  %792 = vmatpush.msrb.mxu1 %v946_v44  ;;  %v851_v44 = vld [vmem:[#allocation9 + $0x20] sm:$0xff] }
 0x2d9   :  { %585 = vmatmul.f32.vlgmr.msra.gmra.mxu3 %v505_v34  ;;  %v852_v34 = vld [vmem:[#allocation9 + $0x28] sm:$0xff] }
 0x2da   :  { %730 = vmatpush.msra.mxu2 %v1390_v59  ;;  %793 = vmatpush.msrb.mxu1 %v947_v48  ;;  %v850_v48 = vld [vmem:[#allocation9 + $0x18] sm:$0xff] }
 0x2db   :  { %737 = vmatpush.msra.mxu3 %v1751_v8 }
 0x2dc   :  { %731 = vmatpush.msra.mxu2 %v1396_v61  ;;  %794 = vmatpush.msrb.mxu1 %v949_v53  ;;  %v848_v53 = vld [vmem:[#allocation9 + $0x8] sm:$0xff] }
 0x2dd   :  { %738 = vmatpush.msra.mxu3 %v1755_v56 }
 0x2de   :  { %732 = vmatpush.msra.mxu2 %v1402_v52  ;;  %795 = vmatpush.msrb.mxu1 %v1854_v23  ;;  %v675_v23 = vld [vmem:[#allocation3 + $0x30] sm:$0xff] }
 0x2df   :  { %739 = vmatpush.msra.mxu3 %v951_v58  ;;  %692 = vmatmul.f32.vlgmr.msra.gmra.mxu0 %v675_v23 }
 0x2e0   :  { %867 = vmatpush.msra.mxu0 %v862_v63 }
 0x2e1   :  { %740 = vmatpush.msra.mxu3 %v952_v17 }
 0x2e2   :  { %868 = vmatpush.msra.mxu0 %v861_v38 }
 0x2e3   :  { %741 = vmatpush.msra.mxu3 %v953_v55 }
 0x2e4   :  { %869 = vmatpush.msra.mxu0 %v860_v1 }
 0x2e5   :  { %742 = vmatpush.msra.mxu3 %v954_v2 }
 0x2e6   :  { %870 = vmatpush.msra.mxu0 %v859_v0 }
 0x2e7   :  { %743 = vmatpush.msra.mxu3 %v955_v3 }
 0x2e8   :  { %871 = vmatpush.msra.mxu0 %v858_v6 }
 0x2e9   :  { %744 = vmatpush.msra.mxu3 %v956_v5 }
 0x2eb   :  { %745 = vmatpush.msra.mxu3 %v957_v7 }
 0x2ed   :  { %746 = vmatpush.msra.mxu3 %v958_v14 }
 0x2ef   :  { %747 = vmatpush.msra.mxu3 %v1312_v54  ;;  %v959_v54 = vld [vmem:[#allocation8 + $0x48] sm:$0xff] }
 0x2f1   :  { %748 = vmatpush.msra.mxu3 %v1875_v9 }
 0x2f3   :  { %749 = vmatpush.msra.mxu3 %v1876_v11 }
 0x2f5   :  { %750 = vmatpush.msra.mxu3 %v1398_v62 }
 0x2f7   :  { %751 = vmatpush.msra.mxu3 %v1877_v13 }
 0x2f9   :  { %752 = vmatpush.msra.mxu3 %v1408_v51 }
 0x33c   :  { %v629_v18 = vpop.f32.mrf.mxu1 }
 0x33d   :  { %v630_v19 = vadd.f32 %v629_v18, %v610_v16 }
 0x33f   :  { %v632_v20 = vmax.f32 %v630_v19, 0.0 }
 0x341   :  { %649 = vmatmul.f32.vlgmr.msrb.gmra.mxu2 %v632_v20  ;;  %712 = vmatmul.f32.vlgmr.msra.gmra.mxu1 %v632_v20 }
 0x342   :  { %801 = vmatpush.msrb.mxu2 %v1724_v35  ;;  %v566_v27 = vpop.f32.mrf.mxu2 }
 0x343   :  { %v567_v29 = vadd.f32 %v1534_v30, %v566_v27 }
 0x344   :  { %802 = vmatpush.msrb.mxu2 %v1727_v4 }
 0x346   :  { %803 = vmatpush.msrb.mxu2 %v1730_v41 }
 0x348   :  { %804 = vmatpush.msrb.mxu2 %v1733_v43 }
 0x34a   :  { %805 = vmatpush.msrb.mxu2 %v1736_v46 }
 0x34c   :  { %806 = vmatpush.msrb.mxu2 %v1739_v50 }
 0x34e   :  { %807 = vmatpush.msrb.mxu2 %v959_v54 }
 0x350   :  { %808 = vmatpush.msrb.mxu2 %v960_v21 }
 0x352   :  { %809 = vmatpush.msrb.mxu2 %v961_v24 }
 0x354   :  { %810 = vmatpush.msrb.mxu2 %v962_v25 }
 0x356   :  { %811 = vmatpush.msrb.mxu2 %v963_v26 }
 0x358   :  { %812 = vmatpush.msrb.mxu2 %v964_v28 }
 0x35a   :  { %813 = vmatpush.msrb.mxu2 %v1384_v57  ;;  %v965_v57 = vld [vmem:[#allocation8 + $0xa8] sm:$0xff] }
 0x35c   :  { %v586_v31 = vpop.f32.mrf.mxu3  ;;  %814 = vmatpush.msrb.mxu2 %v1390_v59  ;;  %v759_v59 = vld [vmem:[#allocation3 + $0x38] sm:$0xff] }
 0x35d   :  { %v587_v32 = vadd.f32 %v586_v31, %v567_v29  ;;  %776 = vmatmul.f32.vlgmr.msrb.gmra.mxu0 %v759_v59 }
 0x35e   :  { %815 = vmatpush.msrb.mxu2 %v1396_v61  ;;  %v693_v61 = vpop.f32.mrf.mxu0 }
 0x35f   :  { %v589_v33 = vmax.f32 %v587_v32, 0.0 }
 0x360   :  { %816 = vmatpush.msrb.mxu2 %v1402_v52  ;;  %v694_v52 = vadd.f32 %v1447_v47, %v693_v61 }
 0x361   :  { %669 = vmatmul.f32.vlgmr.msrb.gmra.mxu3 %v589_v33 }
 0x362   :  { %821 = vmatpush.msrb.mxu3 %v1751_v8  ;;  %v849_v8 = vld [vmem:[#allocation9 + $0x10] sm:$0xff] }
 0x364   :  { %822 = vmatpush.msrb.mxu3 %v1755_v56  ;;  %v847_v56 = vld [vmem:[#allocation9] sm:$0xff] }
 0x366   :  { %823 = vmatpush.msrb.mxu3 %v951_v58 }
 0x368   :  { %824 = vmatpush.msrb.mxu3 %v952_v17 }
 0x36a   :  { %825 = vmatpush.msrb.mxu3 %v953_v55 }
 0x36c   :  { %826 = vmatpush.msrb.mxu3 %v954_v2 }
 0x36e   :  { %827 = vmatpush.msrb.mxu3 %v955_v3 }
 0x370   :  { %828 = vmatpush.msrb.mxu3 %v956_v5  ;;  %v917_v5 = vld [vmem:[%s1802_s6] ss:$0 sm:$0xff] }
 0x372   :  { %829 = vmatpush.msrb.mxu3 %v957_v7 }
 0x374   :  { %830 = vmatpush.msrb.mxu3 %v958_v14 }
 0x376   :  { %831 = vmatpush.msrb.mxu3 %v965_v57 }
 0x378   :  { %832 = vmatpush.msrb.mxu3 %v1875_v9 }
 0x37a   :  { %833 = vmatpush.msrb.mxu3 %v1876_v11 }
 0x37c   :  { %834 = vmatpush.msrb.mxu3 %v1398_v62 }
 0x37e   :  { %835 = vmatpush.msrb.mxu3 %v1877_v13 }
 0x380   :  { %836 = vmatpush.msrb.mxu3 %v1408_v51 }
 0x3be   :  { %v713_v35 = vpop.f32.mrf.mxu1 }
 0x3bf   :  { %v714_v37 = vadd.f32 %v713_v35, %v694_v52 }
 0x3c1   :  { %v716_v4 = vmax.f32 %v714_v37, 0.0 }
 0x3c3   :  { %733 = vmatmul.f32.vlgmr.msra.gmra.mxu2 %v716_v4  ;;  %796 = vmatmul.f32.vlgmr.msrb.gmra.mxu1 %v716_v4 }
 0x3c4   :  { %v650_v39 = vpop.f32.mrf.mxu2 }
 0x3c5   :  { %v651_v9 = vadd.f32 %v1534_v30, %v650_v39 }
 0x3da   :  { %v777_v13 = vpop.f32.mrf.mxu0 }
 0x3db   :  { %v778_v51 = vadd.f32 %v1447_v47, %v777_v13  ;;  %v857_v47 = vld [vmem:[#allocation9 + $0x50] sm:$0xff] }
 0x3dc   :  { %872 = vmatpush.msra.mxu0 %v857_v47 }
 0x3de   :  { %873 = vmatpush.msra.mxu0 %v856_v10 }
 0x3e0   :  { %874 = vmatpush.msra.mxu0 %v855_v36 }
 0x3e2   :  { %875 = vmatpush.msra.mxu0 %v854_v12 }
 0x3e4   :  { %v670_v11 = vpop.f32.mrf.mxu3  ;;  %876 = vmatpush.msra.mxu0 %v853_v40 }
 0x3e5   :  { %v671_v41 = vadd.f32 %v670_v11, %v651_v9 }
 0x3e6   :  { %877 = vmatpush.msra.mxu0 %v852_v34 }
 0x3e7   :  { %v673_v62 = vmax.f32 %v671_v41, 0.0 }
 0x3e8   :  { %878 = vmatpush.msra.mxu0 %v851_v44 }
 0x3e9   :  { %753 = vmatmul.f32.vlgmr.msra.gmra.mxu3 %v673_v62 }
 0x3ea   :  { %879 = vmatpush.msra.mxu0 %v850_v48 }
 0x3ec   :  { %880 = vmatpush.msra.mxu0 %v849_v8 }
 0x3ee   :  { %881 = vmatpush.msra.mxu0 %v848_v53 }
 0x3f0   :  { %882 = vmatpush.msra.mxu0 %v847_v56 }
 0x440   :  { %v797_v42 = vpop.f32.mrf.mxu1 }
 0x441   :  { %v798_v43 = vadd.f32 %v797_v42, %v778_v51 }
 0x443   :  { %v800_v45 = vmax.f32 %v798_v43, 0.0 }
 0x445   :  { %817 = vmatmul.f32.vlgmr.msrb.gmra.mxu2 %v800_v45 }
 0x446   :  { %v734_v46 = vpop.f32.mrf.mxu2 }
 0x447   :  { %v735_v49 = vadd.f32 %v1534_v30, %v734_v46 }
 0x46c   :  { %v754_v50 = vpop.f32.mrf.mxu3 }
 0x46d   :  { %v755_v60 = vadd.f32 %v754_v50, %v735_v49 }
 0x46f   :  { %v757_v22 = vmax.f32 %v755_v60, 0.0 }
 0x471   :  { %837 = vmatmul.f32.vlgmr.msrb.gmra.mxu3 %v757_v22 }
 0x4c8   :  { %v818_v58 = vpop.f32.mrf.mxu2 }
 0x4c9   :  { %v819_v17 = vadd.f32 %v1534_v30, %v818_v58 }
 0x4f4   :  { %v838_v55 = vpop.f32.mrf.mxu3 }
 0x4f5   :  { %v839_v2 = vadd.f32 %v838_v55, %v819_v17 }
 0x4f7   :  { %v841_v3 = vmax.f32 %v839_v2, 0.0 }
 0x4f9   :  { %883 = vmatmul.f32.vlgmr.msra.gmra.mxu0 %v841_v3 }
 0x576   :  { %v884_v7 = vpop.f32.mrf.mxu0 }
 0x577   :  { %v885_v14 = vadd.f32 %v917_v5, %v884_v7 }
 0x579   :  { %887 = vst [vmem:[#allocation11] sm:$0xff] %v885_v14 }
 0x57a   :  { %898 = dma.vmem_to_hbm [thread:$0]  %s894_s24, 128, %s896_s27, [#allocation5]  }
 0x57b   :  { %1092 = dma.done.wait [#allocation5], 128  }
 0x57c   :  { %1093 = vsyncadd [#allocation5], 4294967168 }
 0x57d   :  { %903 = vsyncpa [#allocation4], 1 }
 0x57e   :  { %904 = vsyncpa [#allocation7], 1 }
 0x57f   :  { %905 = vsyncpa [#allocation10], 1 }
 0x580   :  { %906 = vsyncpa [#allocation5], 1 }

</bundles_post_ra>
